<compile_context>
chip_gen: v7x
topology: tpu7x:2x2x1
jax: 0.10.0
libtpu: 0.0.40
codegen_flags: <defaults>
</compile_context>

<pallas_src>
import math

import jax
import jax.numpy as jnp
from jax.experimental import pallas as pl
from jax.experimental.pallas import tpu as pltpu

D_IN = 128
D_MODEL = 8
D_FF = 2
EPS = 1e-5                       # PyTorch layer_norm_eps default
INV_SQRT_D = 1.0 / math.sqrt(D_MODEL)

# ---------------------------------------------------------------------------
# Individual (PyTorch-equivalent) parameter shapes.  All weight matrices are
# stored pre-transposed as (in_features, out_features).
# ---------------------------------------------------------------------------
PARAM_SHAPES = {
    "inn_w": (D_IN, D_MODEL), "inn_b": (1, D_MODEL),
    "enc_sa_wq": (D_MODEL, D_MODEL), "enc_sa_wk": (D_MODEL, D_MODEL),
    "enc_sa_wv": (D_MODEL, D_MODEL), "enc_sa_wo": (D_MODEL, D_MODEL),
    "enc_sa_bq": (1, D_MODEL), "enc_sa_bk": (1, D_MODEL),
    "enc_sa_bv": (1, D_MODEL), "enc_sa_bo": (1, D_MODEL),
    "enc_lin1_w": (D_MODEL, D_FF), "enc_lin1_b": (1, D_FF),
    "enc_lin2_w": (D_FF, D_MODEL), "enc_lin2_b": (1, D_MODEL),
    "enc_n1_g": (1, D_MODEL), "enc_n1_b": (1, D_MODEL),
    "enc_n2_g": (1, D_MODEL), "enc_n2_b": (1, D_MODEL),
    "enc_nf_g": (1, D_MODEL), "enc_nf_b": (1, D_MODEL),
    "dec_sa_wq": (D_MODEL, D_MODEL), "dec_sa_wk": (D_MODEL, D_MODEL),
    "dec_sa_wv": (D_MODEL, D_MODEL), "dec_sa_wo": (D_MODEL, D_MODEL),
    "dec_sa_bq": (1, D_MODEL), "dec_sa_bk": (1, D_MODEL),
    "dec_sa_bv": (1, D_MODEL), "dec_sa_bo": (1, D_MODEL),
    "dec_ca_wq": (D_MODEL, D_MODEL), "dec_ca_wk": (D_MODEL, D_MODEL),
    "dec_ca_wv": (D_MODEL, D_MODEL), "dec_ca_wo": (D_MODEL, D_MODEL),
    "dec_ca_bq": (1, D_MODEL), "dec_ca_bk": (1, D_MODEL),
    "dec_ca_bv": (1, D_MODEL), "dec_ca_bo": (1, D_MODEL),
    "dec_lin1_w": (D_MODEL, D_FF), "dec_lin1_b": (1, D_FF),
    "dec_lin2_w": (D_FF, D_MODEL), "dec_lin2_b": (1, D_MODEL),
    "dec_n1_g": (1, D_MODEL), "dec_n1_b": (1, D_MODEL),
    "dec_n2_g": (1, D_MODEL), "dec_n2_b": (1, D_MODEL),
    "dec_n3_g": (1, D_MODEL), "dec_n3_b": (1, D_MODEL),
    "dec_nf_g": (1, D_MODEL), "dec_nf_b": (1, D_MODEL),
    "out_w": (D_MODEL, 1), "out_b": (1, 1),
}
PARAM_NAMES = list(PARAM_SHAPES.keys())

# ---- column offsets inside the (8, 136) packed small-weight slab ----------
ENC_SA = 0        # [Wq|Wk|Wv|Wo]  -> 32 cols
DEC_SA = 32
DEC_CA = 64
ENC_L1 = 96       # lin1 zero-padded (8,2)->(8,8)
ENC_L2 = 104      # lin2 zero-padded (2,8)->(8,8)
DEC_L1 = 112
DEC_L2 = 120
OUT_W = 128       # output head zero-padded (8,1)->(8,8), column 0 is real
W_COLS = 136

# ---- row indices inside the (32, 8) packed bias / layernorm slab ----------
B_INN = 0
B_ENC_SA = 1      # q,k,v,o biases at rows 1..4
B_DEC_SA = 5
B_DEC_CA = 9
B_ENC_L1, B_ENC_L2 = 13, 14
B_DEC_L1, B_DEC_L2 = 15, 16
B_OUT = 17
G0 = 18           # gammas: enc_n1, enc_n2, enc_nf, dec_n1, dec_n2, dec_n3, dec_nf
BE0 = 25          # betas, same order
VEC_ROWS = 32


# ---------------------------------------------------------------------------
# Kernel: one batch element (S, 128) -> (S, 8) per grid step.
# ---------------------------------------------------------------------------
def _transformer_kernel(x_ref, w_in_ref, wm_ref, vec_ref, o_ref):
    x = x_ref[0]              # (S, 128)  current batch element
    W = wm_ref[...]           # (8, 136)  packed small weights
    V = vec_ref[...]          # (32, 8)   packed biases / LN params

    def row(i):               # (1, 8) bias / gamma / beta row (broadcasts)
        return V[i:i + 1, :]

    def linear(h, w, b):
        return jnp.dot(h, w, preferred_element_type=jnp.float32) + b

    def sigmoid(z):
        # exact math; flip approx=True to push the divide onto the EUP slot
        return pl.reciprocal(1.0 + jnp.exp(-z), approx=False)

    def elu(z):
        return jnp.where(z > 0, z, jnp.exp(z) - 1.0)

    def layernorm(h, i):
        mu = jnp.mean(h, axis=-1, keepdims=True)
        var = jnp.mean(jnp.square(h - mu), axis=-1, keepdims=True)
        return (h - mu) * jax.lax.rsqrt(var + EPS) * row(G0 + i) + row(BE0 + i)

    def softmax(s):
        m = jnp.max(s, axis=-1, keepdims=True)
        e = jnp.exp(s - m)
        return e * pl.reciprocal(jnp.sum(e, axis=-1, keepdims=True), approx=False)

    def attention(q_in, kv_in, c0, b0):
        if q_in is kv_in:     # self-attention: fully fused Q|K|V projection
            qkv = jnp.dot(q_in, W[:, c0:c0 + 24],
                          preferred_element_type=jnp.float32)
            q = qkv[:, 0:8] + row(b0)
            k = qkv[:, 8:16] + row(b0 + 1)
            v = qkv[:, 16:24] + row(b0 + 2)
        else:                 # cross-attention: Q from q_in, fused K|V from kv_in
            q = linear(q_in, W[:, c0:c0 + 8], row(b0))
            kv = jnp.dot(kv_in, W[:, c0 + 8:c0 + 24],
                         preferred_element_type=jnp.float32)
            k = kv[:, 0:8] + row(b0 + 1)
            v = kv[:, 8:16] + row(b0 + 2)
        s = jax.lax.dot_general(q, k, (((1,), (1,)), ((), ())),
                                preferred_element_type=jnp.float32) * INV_SQRT_D
        ctx = jnp.dot(softmax(s), v, preferred_element_type=jnp.float32)
        return linear(ctx, W[:, c0 + 24:c0 + 32], row(b0 + 3))

    def ffn(h, c1, c2, b1, b2):
        # lin1/lin2 are zero-padded to 8x8, so padded lanes stay exactly zero
        h1 = elu(linear(h, W[:, c1:c1 + 8], row(b1)))
        return linear(h1, W[:, c2:c2 + 8], row(b2))

    # ---- input projection + sigmoid (src == tgt) ----
    h0 = sigmoid(linear(x, w_in_ref[...], row(B_INN)))          # (S, 8)

    # ---- encoder layer (post-norm) + final encoder LayerNorm ----
    h = layernorm(h0 + attention(h0, h0, ENC_SA, B_ENC_SA), 0)
    h = layernorm(h + ffn(h, ENC_L1, ENC_L2, B_ENC_L1, B_ENC_L2), 1)
    mem = layernorm(h, 2)

    # ---- decoder layer (post-norm) + final decoder LayerNorm ----
    t = layernorm(h0 + attention(h0, h0, DEC_SA, B_DEC_SA), 3)
    t = layernorm(t + attention(t, mem, DEC_CA, B_DEC_CA), 4)
    t = layernorm(t + ffn(t, DEC_L1, DEC_L2, B_DEC_L1, B_DEC_L2), 5)
    t = layernorm(t, 6)

    # ---- output head: lane-padded to 8, only column 0 is the real logit ----
    o_ref[0] = sigmoid(linear(t, W[:, OUT_W:OUT_W + 8], row(B_OUT)))


# ---------------------------------------------------------------------------
# Host-side parameter packing (done once, outside the per-call hot path).
# ---------------------------------------------------------------------------
def pack_params(p):
    def pad_cols(w):
        return jnp.pad(w, ((0, 0), (0, D_MODEL - w.shape[1])))

    def pad_rows(w):
        return jnp.pad(w, ((0, D_MODEL - w.shape[0]), (0, 0)))

    def padv(v):
        v = v.reshape(-1)
        return jnp.pad(v, (0, D_MODEL - v.shape[0]))

    w_small = jnp.concatenate([
        p["enc_sa_wq"], p["enc_sa_wk"], p["enc_sa_wv"], p["enc_sa_wo"],
        p["dec_sa_wq"], p["dec_sa_wk"], p["dec_sa_wv"], p["dec_sa_wo"],
        p["dec_ca_wq"], p["dec_ca_wk"], p["dec_ca_wv"], p["dec_ca_wo"],
        pad_cols(p["enc_lin1_w"]), pad_rows(p["enc_lin2_w"]),
        pad_cols(p["dec_lin1_w"]), pad_rows(p["dec_lin2_w"]),
        pad_cols(p["out_w"]),
    ], axis=1).astype(jnp.float32)                              # (8, 136)

    vec_rows = [
        p["inn_b"],
        p["enc_sa_bq"], p["enc_sa_bk"], p["enc_sa_bv"], p["enc_sa_bo"],
        p["dec_sa_bq"], p["dec_sa_bk"], p["dec_sa_bv"], p["dec_sa_bo"],
        p["dec_ca_bq"], p["dec_ca_bk"], p["dec_ca_bv"], p["dec_ca_bo"],
        p["enc_lin1_b"], p["enc_lin2_b"],
        p["dec_lin1_b"], p["dec_lin2_b"],
        p["out_b"],
        p["enc_n1_g"], p["enc_n2_g"], p["enc_nf_g"],
        p["dec_n1_g"], p["dec_n2_g"], p["dec_n3_g"], p["dec_nf_g"],
        p["enc_n1_b"], p["enc_n2_b"], p["enc_nf_b"],
        p["dec_n1_b"], p["dec_n2_b"], p["dec_n3_b"], p["dec_nf_b"],
    ]
    vecs = jnp.stack([padv(r) for r in vec_rows], axis=0).astype(jnp.float32)
    return p["inn_w"].astype(jnp.float32), w_small, vecs        # (128,8),(8,136),(32,8)


# ---------------------------------------------------------------------------
# Public forward: x (S, B, 128) -> (S, B, 1), PyTorch seq-first convention.
# ---------------------------------------------------------------------------
def model_forward(x, packed):
    w_in, w_small, vecs = packed
    S, B, _ = x.shape
    x_bm = jnp.transpose(x, (1, 0, 2))                          # (B, S, 128), tiny

    flops = int(2 * B * S * (D_IN * D_MODEL + 16 * D_MODEL * D_MODEL
                             + 4 * S * D_MODEL))
    transc = int(B * S * (4 * D_MODEL + 3 * S))
    nbytes = int(4 * (x.size + w_in.size + w_small.size + vecs.size
                      + B * S * D_MODEL))

    out = pl.pallas_call(
        _transformer_kernel,
        out_shape=jax.ShapeDtypeStruct((B, S, D_MODEL), jnp.float32),
        grid=(B,),
        in_specs=[
            pl.BlockSpec((1, S, D_IN), lambda b: (b, 0, 0)),          # per-batch block
            pl.BlockSpec((D_IN, D_MODEL), lambda b: (0, 0)),          # resident params
            pl.BlockSpec((D_MODEL, W_COLS), lambda b: (0, 0)),
            pl.BlockSpec((VEC_ROWS, D_MODEL), lambda b: (0, 0)),
        ],
        out_specs=pl.BlockSpec((1, S, D_MODEL), lambda b: (b, 0, 0)),
        compiler_params=pltpu.CompilerParams(
            dimension_semantics=("parallel",)),                       # v7x megacore
        cost_estimate=pl.CostEstimate(flops=flops, transcendentals=transc,
                                      bytes_accessed=nbytes),
    )(x_bm, w_in, w_small, vecs)

    # slice the real output column, back to PyTorch (S, B, 1) layout
    return jnp.transpose(out[:, :, :1], (1, 0, 2))


def init_params(key):
    params = {}
    keys = jax.random.split(key, len(PARAM_NAMES))
    for name, k in zip(PARAM_NAMES, keys):
        shape = PARAM_SHAPES[name]
        if name.endswith("_g"):                  # LayerNorm gains
            params[name] = jnp.ones(shape, jnp.float32)
        else:
            fan_in = shape[0] if shape[0] > 1 else shape[1]
            scale = 1.0 / math.sqrt(fan_in)
            params[name] = (scale * jax.random.normal(k, shape)).astype(jnp.float32)
    return params


if __name__ == "__main__":
    key = jax.random.PRNGKey(0)
    k_x, k_p = jax.random.split(key)
    S, B = 8, 2                                  # seq=8, batch=2, feature=128
    x = jax.random.normal(k_x, (S, B, D_IN), dtype=jnp.float32)
    params = init_params(k_p)
    packed = pack_params(params)

    y = jax.jit(model_forward)(x, packed)
    jax.block_until_ready(y)
    assert y.shape == (S, B, 1) and y.dtype == jnp.float32
    assert bool(jnp.all(jnp.isfinite(y)))
    print("KERNEL_OK")
</pallas_src>

<mosaic_0001>
module attributes {stable_mosaic.version = 11 : i64} {
  func.func @_transformer_kernel(%arg0: i32, %arg1: memref<1x8x128xf32, #tpu.memory_space<vmem>>, %arg2: memref<128x8xf32, #tpu.memory_space<vmem>>, %arg3: memref<8x136xf32, #tpu.memory_space<vmem>>, %arg4: memref<32x8xf32, #tpu.memory_space<vmem>>, %arg5: memref<1x8x8xf32, #tpu.memory_space<vmem>>) attributes {dimension_semantics = [#tpu.dimension_semantics<parallel>], iteration_bounds = array<i64: 2>, scalar_prefetch = 0 : i64, scratch_operands = 0 : i64, tpu.core_type = #tpu.core_type<tc>, window_params = [{transform_indices = @transform_0, window_bounds = array<i64: 1, 8, 128>}, {pipeline_mode = #tpu.pipeline_mode<synchronous>, transform_indices = @transform_1, window_bounds = array<i64: 128, 8>}, {pipeline_mode = #tpu.pipeline_mode<synchronous>, transform_indices = @transform_2, window_bounds = array<i64: 8, 136>}, {pipeline_mode = #tpu.pipeline_mode<synchronous>, transform_indices = @transform_3, window_bounds = array<i64: 32, 8>}, {transform_indices = @transform_4, window_bounds = array<i64: 1, 8, 8>}]} {
    %c0 = arith.constant 0 : index
    %c0_0 = arith.constant 0 : index
    %c0_1 = arith.constant 0 : index
    %0 = vector.load %arg1[%c0, %c0_0, %c0_1] : memref<1x8x128xf32, #tpu.memory_space<vmem>>, vector<1x8x128xf32>
    %1 = vector.shape_cast %0 : vector<1x8x128xf32> to vector<8x128xf32>
    %c0_2 = arith.constant 0 : index
    %c0_3 = arith.constant 0 : index
    %2 = vector.load %arg3[%c0_2, %c0_3] : memref<8x136xf32, #tpu.memory_space<vmem>>, vector<8x136xf32>
    %c0_4 = arith.constant 0 : index
    %c0_5 = arith.constant 0 : index
    %3 = vector.load %arg4[%c0_4, %c0_5] : memref<32x8xf32, #tpu.memory_space<vmem>>, vector<32x8xf32>
    %c0_6 = arith.constant 0 : index
    %c0_7 = arith.constant 0 : index
    %4 = vector.load %arg2[%c0_6, %c0_7] : memref<128x8xf32, #tpu.memory_space<vmem>>, vector<128x8xf32>
    %5 = vector.extract_strided_slice %3 {offsets = [0, 0], sizes = [1, 8], strides = [1, 1]} : vector<32x8xf32> to vector<1x8xf32>
    %cst = arith.constant dense<0.000000e+00> : vector<8x8xf32>
    %6 = tpu.matmul %1, %4, %cst {dimension_numbers = #tpu.dot_dimension_numbers<[1], [0], [0], [1], [0, 0, 1, 1], [], []>} : vector<8x128xf32>, vector<128x8xf32>, vector<8x8xf32> -> vector<8x8xf32>
    %7 = vector.broadcast %5 : vector<1x8xf32> to vector<8x8xf32>
    %8 = arith.addf %6, %7 : vector<8x8xf32>
    %cst_8 = arith.constant 0.000000e+00 : f32
    %9 = vector.broadcast %cst_8 : f32 to vector<8x8xf32>
    %10 = arith.subf %9, %8 : vector<8x8xf32>
    %11 = math.exp %10 : vector<8x8xf32>
    %cst_9 = arith.constant 1.000000e+00 : f32
    %12 = vector.broadcast %cst_9 : f32 to vector<8x8xf32>
    %13 = arith.addf %12, %11 : vector<8x8xf32>
    %14 = tpu.reciprocal %13 : vector<8x8xf32> -> vector<8x8xf32>
    %15 = vector.extract_strided_slice %2 {offsets = [0, 0], sizes = [8, 24], strides = [1, 1]} : vector<8x136xf32> to vector<8x24xf32>
    %cst_10 = arith.constant dense<0.000000e+00> : vector<8x24xf32>
    %16 = tpu.matmul %14, %15, %cst_10 {dimension_numbers = #tpu.dot_dimension_numbers<[1], [0], [0], [1], [0, 0, 1, 1], [], []>} : vector<8x8xf32>, vector<8x24xf32>, vector<8x24xf32> -> vector<8x24xf32>
    %17 = vector.extract_strided_slice %16 {offsets = [0, 0], sizes = [8, 8], strides = [1, 1]} : vector<8x24xf32> to vector<8x8xf32>
    %18 = vector.extract_strided_slice %3 {offsets = [1, 0], sizes = [1, 8], strides = [1, 1]} : vector<32x8xf32> to vector<1x8xf32>
    %19 = vector.broadcast %18 : vector<1x8xf32> to vector<8x8xf32>
    %20 = arith.addf %17, %19 : vector<8x8xf32>
    %21 = vector.extract_strided_slice %16 {offsets = [0, 8], sizes = [8, 8], strides = [1, 1]} : vector<8x24xf32> to vector<8x8xf32>
    %22 = vector.extract_strided_slice %3 {offsets = [2, 0], sizes = [1, 8], strides = [1, 1]} : vector<32x8xf32> to vector<1x8xf32>
    %23 = vector.broadcast %22 : vector<1x8xf32> to vector<8x8xf32>
    %24 = arith.addf %21, %23 : vector<8x8xf32>
    %25 = vector.extract_strided_slice %16 {offsets = [0, 16], sizes = [8, 8], strides = [1, 1]} : vector<8x24xf32> to vector<8x8xf32>
    %26 = vector.extract_strided_slice %3 {offsets = [3, 0], sizes = [1, 8], strides = [1, 1]} : vector<32x8xf32> to vector<1x8xf32>
    %27 = vector.broadcast %26 : vector<1x8xf32> to vector<8x8xf32>
    %28 = arith.addf %25, %27 : vector<8x8xf32>
    %cst_11 = arith.constant dense<0.000000e+00> : vector<8x8xf32>
    %29 = tpu.matmul %20, %24, %cst_11 {dimension_numbers = #tpu.dot_dimension_numbers<[1], [1], [0], [0], [0, 0, 1, 0], [], []>} : vector<8x8xf32>, vector<8x8xf32>, vector<8x8xf32> -> vector<8x8xf32>
    %cst_12 = arith.constant 0.353553385 : f32
    %30 = vector.broadcast %cst_12 : f32 to vector<8x8xf32>
    %31 = arith.mulf %29, %30 : vector<8x8xf32>
    %cst_13 = arith.constant dense<0xFF800000> : vector<8xf32>
    %32 = vector.multi_reduction <maximumf>, %31, %cst_13 [1] : vector<8x8xf32> to vector<8xf32>
    %33 = vector.shape_cast %32 : vector<8xf32> to vector<8x1xf32>
    %34 = vector.broadcast %33 : vector<8x1xf32> to vector<8x8xf32>
    %35 = arith.subf %31, %34 : vector<8x8xf32>
    %36 = math.exp %35 : vector<8x8xf32>
    %cst_14 = arith.constant dense<0.000000e+00> : vector<8xf32>
    %37 = vector.multi_reduction <add>, %36, %cst_14 [1] : vector<8x8xf32> to vector<8xf32>
    %38 = vector.shape_cast %37 : vector<8xf32> to vector<8x1xf32>
    %39 = tpu.reciprocal %38 : vector<8x1xf32> -> vector<8x1xf32>
    %40 = vector.broadcast %39 : vector<8x1xf32> to vector<8x8xf32>
    %41 = arith.mulf %36, %40 : vector<8x8xf32>
    %cst_15 = arith.constant dense<0.000000e+00> : vector<8x8xf32>
    %42 = tpu.matmul %41, %28, %cst_15 {dimension_numbers = #tpu.dot_dimension_numbers<[1], [0], [0], [1], [0, 0, 1, 1], [], []>} : vector<8x8xf32>, vector<8x8xf32>, vector<8x8xf32> -> vector<8x8xf32>
    %43 = vector.extract_strided_slice %2 {offsets = [0, 24], sizes = [8, 8], strides = [1, 1]} : vector<8x136xf32> to vector<8x8xf32>
    %44 = vector.extract_strided_slice %3 {offsets = [4, 0], sizes = [1, 8], strides = [1, 1]} : vector<32x8xf32> to vector<1x8xf32>
    %cst_16 = arith.constant dense<0.000000e+00> : vector<8x8xf32>
    %45 = tpu.matmul %42, %43, %cst_16 {dimension_numbers = #tpu.dot_dimension_numbers<[1], [0], [0], [1], [0, 0, 1, 1], [], []>} : vector<8x8xf32>, vector<8x8xf32>, vector<8x8xf32> -> vector<8x8xf32>
    %46 = vector.broadcast %44 : vector<1x8xf32> to vector<8x8xf32>
    %47 = arith.addf %45, %46 : vector<8x8xf32>
    %48 = arith.addf %14, %47 : vector<8x8xf32>
    %cst_17 = arith.constant dense<0.000000e+00> : vector<8xf32>
    %49 = vector.multi_reduction <add>, %48, %cst_17 [1] : vector<8x8xf32> to vector<8xf32>
    %50 = vector.shape_cast %49 : vector<8xf32> to vector<8x1xf32>
    %cst_18 = arith.constant 8.000000e+00 : f32
    %51 = vector.broadcast %cst_18 : f32 to vector<8x1xf32>
    %52 = arith.divf %50, %51 : vector<8x1xf32>
    %53 = vector.broadcast %52 : vector<8x1xf32> to vector<8x8xf32>
    %54 = arith.subf %48, %53 : vector<8x8xf32>
    %55 = arith.mulf %54, %54 : vector<8x8xf32>
    %cst_19 = arith.constant dense<0.000000e+00> : vector<8xf32>
    %56 = vector.multi_reduction <add>, %55, %cst_19 [1] : vector<8x8xf32> to vector<8xf32>
    %57 = vector.shape_cast %56 : vector<8xf32> to vector<8x1xf32>
    %cst_20 = arith.constant 8.000000e+00 : f32
    %58 = vector.broadcast %cst_20 : f32 to vector<8x1xf32>
    %59 = arith.divf %57, %58 : vector<8x1xf32>
    %60 = vector.broadcast %52 : vector<8x1xf32> to vector<8x8xf32>
    %61 = arith.subf %48, %60 : vector<8x8xf32>
    %cst_21 = arith.constant 9.99999974E-6 : f32
    %62 = vector.broadcast %cst_21 : f32 to vector<8x1xf32>
    %63 = arith.addf %59, %62 : vector<8x1xf32>
    %64 = math.rsqrt %63 : vector<8x1xf32>
    %65 = vector.broadcast %64 : vector<8x1xf32> to vector<8x8xf32>
    %66 = arith.mulf %61, %65 : vector<8x8xf32>
    %67 = vector.extract_strided_slice %3 {offsets = [18, 0], sizes = [1, 8], strides = [1, 1]} : vector<32x8xf32> to vector<1x8xf32>
    %68 = vector.broadcast %67 : vector<1x8xf32> to vector<8x8xf32>
    %69 = arith.mulf %66, %68 : vector<8x8xf32>
    %70 = vector.extract_strided_slice %3 {offsets = [25, 0], sizes = [1, 8], strides = [1, 1]} : vector<32x8xf32> to vector<1x8xf32>
    %71 = vector.broadcast %70 : vector<1x8xf32> to vector<8x8xf32>
    %72 = arith.addf %69, %71 : vector<8x8xf32>
    %73 = vector.extract_strided_slice %2 {offsets = [0, 96], sizes = [8, 8], strides = [1, 1]} : vector<8x136xf32> to vector<8x8xf32>
    %74 = vector.extract_strided_slice %3 {offsets = [13, 0], sizes = [1, 8], strides = [1, 1]} : vector<32x8xf32> to vector<1x8xf32>
    %cst_22 = arith.constant dense<0.000000e+00> : vector<8x8xf32>
    %75 = tpu.matmul %72, %73, %cst_22 {dimension_numbers = #tpu.dot_dimension_numbers<[1], [0], [0], [1], [0, 0, 1, 1], [], []>} : vector<8x8xf32>, vector<8x8xf32>, vector<8x8xf32> -> vector<8x8xf32>
    %76 = vector.broadcast %74 : vector<1x8xf32> to vector<8x8xf32>
    %77 = arith.addf %75, %76 : vector<8x8xf32>
    %cst_23 = arith.constant 0.000000e+00 : f32
    %78 = vector.broadcast %cst_23 : f32 to vector<8x8xf32>
    %79 = arith.cmpf ogt, %77, %78 : vector<8x8xf32>
    %80 = math.exp %77 : vector<8x8xf32>
    %cst_24 = arith.constant 1.000000e+00 : f32
    %81 = vector.broadcast %cst_24 : f32 to vector<8x8xf32>
    %82 = arith.subf %80, %81 : vector<8x8xf32>
    %83 = arith.select %79, %77, %82 : vector<8x8xi1>, vector<8x8xf32>
    %84 = vector.extract_strided_slice %2 {offsets = [0, 104], sizes = [8, 8], strides = [1, 1]} : vector<8x136xf32> to vector<8x8xf32>
    %85 = vector.extract_strided_slice %3 {offsets = [14, 0], sizes = [1, 8], strides = [1, 1]} : vector<32x8xf32> to vector<1x8xf32>
    %cst_25 = arith.constant dense<0.000000e+00> : vector<8x8xf32>
    %86 = tpu.matmul %83, %84, %cst_25 {dimension_numbers = #tpu.dot_dimension_numbers<[1], [0], [0], [1], [0, 0, 1, 1], [], []>} : vector<8x8xf32>, vector<8x8xf32>, vector<8x8xf32> -> vector<8x8xf32>
    %87 = vector.broadcast %85 : vector<1x8xf32> to vector<8x8xf32>
    %88 = arith.addf %86, %87 : vector<8x8xf32>
    %89 = arith.addf %72, %88 : vector<8x8xf32>
    %cst_26 = arith.constant dense<0.000000e+00> : vector<8xf32>
    %90 = vector.multi_reduction <add>, %89, %cst_26 [1] : vector<8x8xf32> to vector<8xf32>
    %91 = vector.shape_cast %90 : vector<8xf32> to vector<8x1xf32>
    %cst_27 = arith.constant 8.000000e+00 : f32
    %92 = vector.broadcast %cst_27 : f32 to vector<8x1xf32>
    %93 = arith.divf %91, %92 : vector<8x1xf32>
    %94 = vector.broadcast %93 : vector<8x1xf32> to vector<8x8xf32>
    %95 = arith.subf %89, %94 : vector<8x8xf32>
    %96 = arith.mulf %95, %95 : vector<8x8xf32>
    %cst_28 = arith.constant dense<0.000000e+00> : vector<8xf32>
    %97 = vector.multi_reduction <add>, %96, %cst_28 [1] : vector<8x8xf32> to vector<8xf32>
    %98 = vector.shape_cast %97 : vector<8xf32> to vector<8x1xf32>
    %cst_29 = arith.constant 8.000000e+00 : f32
    %99 = vector.broadcast %cst_29 : f32 to vector<8x1xf32>
    %100 = arith.divf %98, %99 : vector<8x1xf32>
    %101 = vector.broadcast %93 : vector<8x1xf32> to vector<8x8xf32>
    %102 = arith.subf %89, %101 : vector<8x8xf32>
    %cst_30 = arith.constant 9.99999974E-6 : f32
    %103 = vector.broadcast %cst_30 : f32 to vector<8x1xf32>
    %104 = arith.addf %100, %103 : vector<8x1xf32>
    %105 = math.rsqrt %104 : vector<8x1xf32>
    %106 = vector.broadcast %105 : vector<8x1xf32> to vector<8x8xf32>
    %107 = arith.mulf %102, %106 : vector<8x8xf32>
    %108 = vector.extract_strided_slice %3 {offsets = [19, 0], sizes = [1, 8], strides = [1, 1]} : vector<32x8xf32> to vector<1x8xf32>
    %109 = vector.broadcast %108 : vector<1x8xf32> to vector<8x8xf32>
    %110 = arith.mulf %107, %109 : vector<8x8xf32>
    %111 = vector.extract_strided_slice %3 {offsets = [26, 0], sizes = [1, 8], strides = [1, 1]} : vector<32x8xf32> to vector<1x8xf32>
    %112 = vector.broadcast %111 : vector<1x8xf32> to vector<8x8xf32>
    %113 = arith.addf %110, %112 : vector<8x8xf32>
    %cst_31 = arith.constant dense<0.000000e+00> : vector<8xf32>
    %114 = vector.multi_reduction <add>, %113, %cst_31 [1] : vector<8x8xf32> to vector<8xf32>
    %115 = vector.shape_cast %114 : vector<8xf32> to vector<8x1xf32>
    %cst_32 = arith.constant 8.000000e+00 : f32
    %116 = vector.broadcast %cst_32 : f32 to vector<8x1xf32>
    %117 = arith.divf %115, %116 : vector<8x1xf32>
    %118 = vector.broadcast %117 : vector<8x1xf32> to vector<8x8xf32>
    %119 = arith.subf %113, %118 : vector<8x8xf32>
    %120 = arith.mulf %119, %119 : vector<8x8xf32>
    %cst_33 = arith.constant dense<0.000000e+00> : vector<8xf32>
    %121 = vector.multi_reduction <add>, %120, %cst_33 [1] : vector<8x8xf32> to vector<8xf32>
    %122 = vector.shape_cast %121 : vector<8xf32> to vector<8x1xf32>
    %cst_34 = arith.constant 8.000000e+00 : f32
    %123 = vector.broadcast %cst_34 : f32 to vector<8x1xf32>
    %124 = arith.divf %122, %123 : vector<8x1xf32>
    %125 = vector.broadcast %117 : vector<8x1xf32> to vector<8x8xf32>
    %126 = arith.subf %113, %125 : vector<8x8xf32>
    %cst_35 = arith.constant 9.99999974E-6 : f32
    %127 = vector.broadcast %cst_35 : f32 to vector<8x1xf32>
    %128 = arith.addf %124, %127 : vector<8x1xf32>
    %129 = math.rsqrt %128 : vector<8x1xf32>
    %130 = vector.broadcast %129 : vector<8x1xf32> to vector<8x8xf32>
    %131 = arith.mulf %126, %130 : vector<8x8xf32>
    %132 = vector.extract_strided_slice %3 {offsets = [20, 0], sizes = [1, 8], strides = [1, 1]} : vector<32x8xf32> to vector<1x8xf32>
    %133 = vector.broadcast %132 : vector<1x8xf32> to vector<8x8xf32>
    %134 = arith.mulf %131, %133 : vector<8x8xf32>
    %135 = vector.extract_strided_slice %3 {offsets = [27, 0], sizes = [1, 8], strides = [1, 1]} : vector<32x8xf32> to vector<1x8xf32>
    %136 = vector.broadcast %135 : vector<1x8xf32> to vector<8x8xf32>
    %137 = arith.addf %134, %136 : vector<8x8xf32>
    %138 = vector.extract_strided_slice %2 {offsets = [0, 32], sizes = [8, 24], strides = [1, 1]} : vector<8x136xf32> to vector<8x24xf32>
    %cst_36 = arith.constant dense<0.000000e+00> : vector<8x24xf32>
    %139 = tpu.matmul %14, %138, %cst_36 {dimension_numbers = #tpu.dot_dimension_numbers<[1], [0], [0], [1], [0, 0, 1, 1], [], []>} : vector<8x8xf32>, vector<8x24xf32>, vector<8x24xf32> -> vector<8x24xf32>
    %140 = vector.extract_strided_slice %139 {offsets = [0, 0], sizes = [8, 8], strides = [1, 1]} : vector<8x24xf32> to vector<8x8xf32>
    %141 = vector.extract_strided_slice %3 {offsets = [5, 0], sizes = [1, 8], strides = [1, 1]} : vector<32x8xf32> to vector<1x8xf32>
    %142 = vector.broadcast %141 : vector<1x8xf32> to vector<8x8xf32>
    %143 = arith.addf %140, %142 : vector<8x8xf32>
    %144 = vector.extract_strided_slice %139 {offsets = [0, 8], sizes = [8, 8], strides = [1, 1]} : vector<8x24xf32> to vector<8x8xf32>
    %145 = vector.extract_strided_slice %3 {offsets = [6, 0], sizes = [1, 8], strides = [1, 1]} : vector<32x8xf32> to vector<1x8xf32>
    %146 = vector.broadcast %145 : vector<1x8xf32> to vector<8x8xf32>
    %147 = arith.addf %144, %146 : vector<8x8xf32>
    %148 = vector.extract_strided_slice %139 {offsets = [0, 16], sizes = [8, 8], strides = [1, 1]} : vector<8x24xf32> to vector<8x8xf32>
    %149 = vector.extract_strided_slice %3 {offsets = [7, 0], sizes = [1, 8], strides = [1, 1]} : vector<32x8xf32> to vector<1x8xf32>
    %150 = vector.broadcast %149 : vector<1x8xf32> to vector<8x8xf32>
    %151 = arith.addf %148, %150 : vector<8x8xf32>
    %cst_37 = arith.constant dense<0.000000e+00> : vector<8x8xf32>
    %152 = tpu.matmul %143, %147, %cst_37 {dimension_numbers = #tpu.dot_dimension_numbers<[1], [1], [0], [0], [0, 0, 1, 0], [], []>} : vector<8x8xf32>, vector<8x8xf32>, vector<8x8xf32> -> vector<8x8xf32>
    %cst_38 = arith.constant 0.353553385 : f32
    %153 = vector.broadcast %cst_38 : f32 to vector<8x8xf32>
    %154 = arith.mulf %152, %153 : vector<8x8xf32>
    %cst_39 = arith.constant dense<0xFF800000> : vector<8xf32>
    %155 = vector.multi_reduction <maximumf>, %154, %cst_39 [1] : vector<8x8xf32> to vector<8xf32>
    %156 = vector.shape_cast %155 : vector<8xf32> to vector<8x1xf32>
    %157 = vector.broadcast %156 : vector<8x1xf32> to vector<8x8xf32>
    %158 = arith.subf %154, %157 : vector<8x8xf32>
    %159 = math.exp %158 : vector<8x8xf32>
    %cst_40 = arith.constant dense<0.000000e+00> : vector<8xf32>
    %160 = vector.multi_reduction <add>, %159, %cst_40 [1] : vector<8x8xf32> to vector<8xf32>
    %161 = vector.shape_cast %160 : vector<8xf32> to vector<8x1xf32>
    %162 = tpu.reciprocal %161 : vector<8x1xf32> -> vector<8x1xf32>
    %163 = vector.broadcast %162 : vector<8x1xf32> to vector<8x8xf32>
    %164 = arith.mulf %159, %163 : vector<8x8xf32>
    %cst_41 = arith.constant dense<0.000000e+00> : vector<8x8xf32>
    %165 = tpu.matmul %164, %151, %cst_41 {dimension_numbers = #tpu.dot_dimension_numbers<[1], [0], [0], [1], [0, 0, 1, 1], [], []>} : vector<8x8xf32>, vector<8x8xf32>, vector<8x8xf32> -> vector<8x8xf32>
    %166 = vector.extract_strided_slice %2 {offsets = [0, 56], sizes = [8, 8], strides = [1, 1]} : vector<8x136xf32> to vector<8x8xf32>
    %167 = vector.extract_strided_slice %3 {offsets = [8, 0], sizes = [1, 8], strides = [1, 1]} : vector<32x8xf32> to vector<1x8xf32>
    %cst_42 = arith.constant dense<0.000000e+00> : vector<8x8xf32>
    %168 = tpu.matmul %165, %166, %cst_42 {dimension_numbers = #tpu.dot_dimension_numbers<[1], [0], [0], [1], [0, 0, 1, 1], [], []>} : vector<8x8xf32>, vector<8x8xf32>, vector<8x8xf32> -> vector<8x8xf32>
    %169 = vector.broadcast %167 : vector<1x8xf32> to vector<8x8xf32>
    %170 = arith.addf %168, %169 : vector<8x8xf32>
    %171 = arith.addf %14, %170 : vector<8x8xf32>
    %cst_43 = arith.constant dense<0.000000e+00> : vector<8xf32>
    %172 = vector.multi_reduction <add>, %171, %cst_43 [1] : vector<8x8xf32> to vector<8xf32>
    %173 = vector.shape_cast %172 : vector<8xf32> to vector<8x1xf32>
    %cst_44 = arith.constant 8.000000e+00 : f32
    %174 = vector.broadcast %cst_44 : f32 to vector<8x1xf32>
    %175 = arith.divf %173, %174 : vector<8x1xf32>
    %176 = vector.broadcast %175 : vector<8x1xf32> to vector<8x8xf32>
    %177 = arith.subf %171, %176 : vector<8x8xf32>
    %178 = arith.mulf %177, %177 : vector<8x8xf32>
    %cst_45 = arith.constant dense<0.000000e+00> : vector<8xf32>
    %179 = vector.multi_reduction <add>, %178, %cst_45 [1] : vector<8x8xf32> to vector<8xf32>
    %180 = vector.shape_cast %179 : vector<8xf32> to vector<8x1xf32>
    %cst_46 = arith.constant 8.000000e+00 : f32
    %181 = vector.broadcast %cst_46 : f32 to vector<8x1xf32>
    %182 = arith.divf %180, %181 : vector<8x1xf32>
    %183 = vector.broadcast %175 : vector<8x1xf32> to vector<8x8xf32>
    %184 = arith.subf %171, %183 : vector<8x8xf32>
    %cst_47 = arith.constant 9.99999974E-6 : f32
    %185 = vector.broadcast %cst_47 : f32 to vector<8x1xf32>
    %186 = arith.addf %182, %185 : vector<8x1xf32>
    %187 = math.rsqrt %186 : vector<8x1xf32>
    %188 = vector.broadcast %187 : vector<8x1xf32> to vector<8x8xf32>
    %189 = arith.mulf %184, %188 : vector<8x8xf32>
    %190 = vector.extract_strided_slice %3 {offsets = [21, 0], sizes = [1, 8], strides = [1, 1]} : vector<32x8xf32> to vector<1x8xf32>
    %191 = vector.broadcast %190 : vector<1x8xf32> to vector<8x8xf32>
    %192 = arith.mulf %189, %191 : vector<8x8xf32>
    %193 = vector.extract_strided_slice %3 {offsets = [28, 0], sizes = [1, 8], strides = [1, 1]} : vector<32x8xf32> to vector<1x8xf32>
    %194 = vector.broadcast %193 : vector<1x8xf32> to vector<8x8xf32>
    %195 = arith.addf %192, %194 : vector<8x8xf32>
    %196 = vector.extract_strided_slice %2 {offsets = [0, 64], sizes = [8, 8], strides = [1, 1]} : vector<8x136xf32> to vector<8x8xf32>
    %197 = vector.extract_strided_slice %3 {offsets = [9, 0], sizes = [1, 8], strides = [1, 1]} : vector<32x8xf32> to vector<1x8xf32>
    %cst_48 = arith.constant dense<0.000000e+00> : vector<8x8xf32>
    %198 = tpu.matmul %195, %196, %cst_48 {dimension_numbers = #tpu.dot_dimension_numbers<[1], [0], [0], [1], [0, 0, 1, 1], [], []>} : vector<8x8xf32>, vector<8x8xf32>, vector<8x8xf32> -> vector<8x8xf32>
    %199 = vector.broadcast %197 : vector<1x8xf32> to vector<8x8xf32>
    %200 = arith.addf %198, %199 : vector<8x8xf32>
    %201 = vector.extract_strided_slice %2 {offsets = [0, 72], sizes = [8, 16], strides = [1, 1]} : vector<8x136xf32> to vector<8x16xf32>
    %cst_49 = arith.constant dense<0.000000e+00> : vector<8x16xf32>
    %202 = tpu.matmul %137, %201, %cst_49 {dimension_numbers = #tpu.dot_dimension_numbers<[1], [0], [0], [1], [0, 0, 1, 1], [], []>} : vector<8x8xf32>, vector<8x16xf32>, vector<8x16xf32> -> vector<8x16xf32>
    %203 = vector.extract_strided_slice %202 {offsets = [0, 0], sizes = [8, 8], strides = [1, 1]} : vector<8x16xf32> to vector<8x8xf32>
    %204 = vector.extract_strided_slice %3 {offsets = [10, 0], sizes = [1, 8], strides = [1, 1]} : vector<32x8xf32> to vector<1x8xf32>
    %205 = vector.broadcast %204 : vector<1x8xf32> to vector<8x8xf32>
    %206 = arith.addf %203, %205 : vector<8x8xf32>
    %207 = vector.extract_strided_slice %202 {offsets = [0, 8], sizes = [8, 8], strides = [1, 1]} : vector<8x16xf32> to vector<8x8xf32>
    %208 = vector.extract_strided_slice %3 {offsets = [11, 0], sizes = [1, 8], strides = [1, 1]} : vector<32x8xf32> to vector<1x8xf32>
    %209 = vector.broadcast %208 : vector<1x8xf32> to vector<8x8xf32>
    %210 = arith.addf %207, %209 : vector<8x8xf32>
    %cst_50 = arith.constant dense<0.000000e+00> : vector<8x8xf32>
    %211 = tpu.matmul %200, %206, %cst_50 {dimension_numbers = #tpu.dot_dimension_numbers<[1], [1], [0], [0], [0, 0, 1, 0], [], []>} : vector<8x8xf32>, vector<8x8xf32>, vector<8x8xf32> -> vector<8x8xf32>
    %cst_51 = arith.constant 0.353553385 : f32
    %212 = vector.broadcast %cst_51 : f32 to vector<8x8xf32>
    %213 = arith.mulf %211, %212 : vector<8x8xf32>
    %cst_52 = arith.constant dense<0xFF800000> : vector<8xf32>
    %214 = vector.multi_reduction <maximumf>, %213, %cst_52 [1] : vector<8x8xf32> to vector<8xf32>
    %215 = vector.shape_cast %214 : vector<8xf32> to vector<8x1xf32>
    %216 = vector.broadcast %215 : vector<8x1xf32> to vector<8x8xf32>
    %217 = arith.subf %213, %216 : vector<8x8xf32>
    %218 = math.exp %217 : vector<8x8xf32>
    %cst_53 = arith.constant dense<0.000000e+00> : vector<8xf32>
    %219 = vector.multi_reduction <add>, %218, %cst_53 [1] : vector<8x8xf32> to vector<8xf32>
    %220 = vector.shape_cast %219 : vector<8xf32> to vector<8x1xf32>
    %221 = tpu.reciprocal %220 : vector<8x1xf32> -> vector<8x1xf32>
    %222 = vector.broadcast %221 : vector<8x1xf32> to vector<8x8xf32>
    %223 = arith.mulf %218, %222 : vector<8x8xf32>
    %cst_54 = arith.constant dense<0.000000e+00> : vector<8x8xf32>
    %224 = tpu.matmul %223, %210, %cst_54 {dimension_numbers = #tpu.dot_dimension_numbers<[1], [0], [0], [1], [0, 0, 1, 1], [], []>} : vector<8x8xf32>, vector<8x8xf32>, vector<8x8xf32> -> vector<8x8xf32>
    %225 = vector.extract_strided_slice %2 {offsets = [0, 88], sizes = [8, 8], strides = [1, 1]} : vector<8x136xf32> to vector<8x8xf32>
    %226 = vector.extract_strided_slice %3 {offsets = [12, 0], sizes = [1, 8], strides = [1, 1]} : vector<32x8xf32> to vector<1x8xf32>
    %cst_55 = arith.constant dense<0.000000e+00> : vector<8x8xf32>
    %227 = tpu.matmul %224, %225, %cst_55 {dimension_numbers = #tpu.dot_dimension_numbers<[1], [0], [0], [1], [0, 0, 1, 1], [], []>} : vector<8x8xf32>, vector<8x8xf32>, vector<8x8xf32> -> vector<8x8xf32>
    %228 = vector.broadcast %226 : vector<1x8xf32> to vector<8x8xf32>
    %229 = arith.addf %227, %228 : vector<8x8xf32>
    %230 = arith.addf %195, %229 : vector<8x8xf32>
    %cst_56 = arith.constant dense<0.000000e+00> : vector<8xf32>
    %231 = vector.multi_reduction <add>, %230, %cst_56 [1] : vector<8x8xf32> to vector<8xf32>
    %232 = vector.shape_cast %231 : vector<8xf32> to vector<8x1xf32>
    %cst_57 = arith.constant 8.000000e+00 : f32
    %233 = vector.broadcast %cst_57 : f32 to vector<8x1xf32>
    %234 = arith.divf %232, %233 : vector<8x1xf32>
    %235 = vector.broadcast %234 : vector<8x1xf32> to vector<8x8xf32>
    %236 = arith.subf %230, %235 : vector<8x8xf32>
    %237 = arith.mulf %236, %236 : vector<8x8xf32>
    %cst_58 = arith.constant dense<0.000000e+00> : vector<8xf32>
    %238 = vector.multi_reduction <add>, %237, %cst_58 [1] : vector<8x8xf32> to vector<8xf32>
    %239 = vector.shape_cast %238 : vector<8xf32> to vector<8x1xf32>
    %cst_59 = arith.constant 8.000000e+00 : f32
    %240 = vector.broadcast %cst_59 : f32 to vector<8x1xf32>
    %241 = arith.divf %239, %240 : vector<8x1xf32>
    %242 = vector.broadcast %234 : vector<8x1xf32> to vector<8x8xf32>
    %243 = arith.subf %230, %242 : vector<8x8xf32>
    %cst_60 = arith.constant 9.99999974E-6 : f32
    %244 = vector.broadcast %cst_60 : f32 to vector<8x1xf32>
    %245 = arith.addf %241, %244 : vector<8x1xf32>
    %246 = math.rsqrt %245 : vector<8x1xf32>
    %247 = vector.broadcast %246 : vector<8x1xf32> to vector<8x8xf32>
    %248 = arith.mulf %243, %247 : vector<8x8xf32>
    %249 = vector.extract_strided_slice %3 {offsets = [22, 0], sizes = [1, 8], strides = [1, 1]} : vector<32x8xf32> to vector<1x8xf32>
    %250 = vector.broadcast %249 : vector<1x8xf32> to vector<8x8xf32>
    %251 = arith.mulf %248, %250 : vector<8x8xf32>
    %252 = vector.extract_strided_slice %3 {offsets = [29, 0], sizes = [1, 8], strides = [1, 1]} : vector<32x8xf32> to vector<1x8xf32>
    %253 = vector.broadcast %252 : vector<1x8xf32> to vector<8x8xf32>
    %254 = arith.addf %251, %253 : vector<8x8xf32>
    %255 = vector.extract_strided_slice %2 {offsets = [0, 112], sizes = [8, 8], strides = [1, 1]} : vector<8x136xf32> to vector<8x8xf32>
    %256 = vector.extract_strided_slice %3 {offsets = [15, 0], sizes = [1, 8], strides = [1, 1]} : vector<32x8xf32> to vector<1x8xf32>
    %cst_61 = arith.constant dense<0.000000e+00> : vector<8x8xf32>
    %257 = tpu.matmul %254, %255, %cst_61 {dimension_numbers = #tpu.dot_dimension_numbers<[1], [0], [0], [1], [0, 0, 1, 1], [], []>} : vector<8x8xf32>, vector<8x8xf32>, vector<8x8xf32> -> vector<8x8xf32>
    %258 = vector.broadcast %256 : vector<1x8xf32> to vector<8x8xf32>
    %259 = arith.addf %257, %258 : vector<8x8xf32>
    %cst_62 = arith.constant 0.000000e+00 : f32
    %260 = vector.broadcast %cst_62 : f32 to vector<8x8xf32>
    %261 = arith.cmpf ogt, %259, %260 : vector<8x8xf32>
    %262 = math.exp %259 : vector<8x8xf32>
    %cst_63 = arith.constant 1.000000e+00 : f32
    %263 = vector.broadcast %cst_63 : f32 to vector<8x8xf32>
    %264 = arith.subf %262, %263 : vector<8x8xf32>
    %265 = arith.select %261, %259, %264 : vector<8x8xi1>, vector<8x8xf32>
    %266 = vector.extract_strided_slice %2 {offsets = [0, 120], sizes = [8, 8], strides = [1, 1]} : vector<8x136xf32> to vector<8x8xf32>
    %267 = vector.extract_strided_slice %3 {offsets = [16, 0], sizes = [1, 8], strides = [1, 1]} : vector<32x8xf32> to vector<1x8xf32>
    %cst_64 = arith.constant dense<0.000000e+00> : vector<8x8xf32>
    %268 = tpu.matmul %265, %266, %cst_64 {dimension_numbers = #tpu.dot_dimension_numbers<[1], [0], [0], [1], [0, 0, 1, 1], [], []>} : vector<8x8xf32>, vector<8x8xf32>, vector<8x8xf32> -> vector<8x8xf32>
    %269 = vector.broadcast %267 : vector<1x8xf32> to vector<8x8xf32>
    %270 = arith.addf %268, %269 : vector<8x8xf32>
    %271 = arith.addf %254, %270 : vector<8x8xf32>
    %cst_65 = arith.constant dense<0.000000e+00> : vector<8xf32>
    %272 = vector.multi_reduction <add>, %271, %cst_65 [1] : vector<8x8xf32> to vector<8xf32>
    %273 = vector.shape_cast %272 : vector<8xf32> to vector<8x1xf32>
    %cst_66 = arith.constant 8.000000e+00 : f32
    %274 = vector.broadcast %cst_66 : f32 to vector<8x1xf32>
    %275 = arith.divf %273, %274 : vector<8x1xf32>
    %276 = vector.broadcast %275 : vector<8x1xf32> to vector<8x8xf32>
    %277 = arith.subf %271, %276 : vector<8x8xf32>
    %278 = arith.mulf %277, %277 : vector<8x8xf32>
    %cst_67 = arith.constant dense<0.000000e+00> : vector<8xf32>
    %279 = vector.multi_reduction <add>, %278, %cst_67 [1] : vector<8x8xf32> to vector<8xf32>
    %280 = vector.shape_cast %279 : vector<8xf32> to vector<8x1xf32>
    %cst_68 = arith.constant 8.000000e+00 : f32
    %281 = vector.broadcast %cst_68 : f32 to vector<8x1xf32>
    %282 = arith.divf %280, %281 : vector<8x1xf32>
    %283 = vector.broadcast %275 : vector<8x1xf32> to vector<8x8xf32>
    %284 = arith.subf %271, %283 : vector<8x8xf32>
    %cst_69 = arith.constant 9.99999974E-6 : f32
    %285 = vector.broadcast %cst_69 : f32 to vector<8x1xf32>
    %286 = arith.addf %282, %285 : vector<8x1xf32>
    %287 = math.rsqrt %286 : vector<8x1xf32>
    %288 = vector.broadcast %287 : vector<8x1xf32> to vector<8x8xf32>
    %289 = arith.mulf %284, %288 : vector<8x8xf32>
    %290 = vector.extract_strided_slice %3 {offsets = [23, 0], sizes = [1, 8], strides = [1, 1]} : vector<32x8xf32> to vector<1x8xf32>
    %291 = vector.broadcast %290 : vector<1x8xf32> to vector<8x8xf32>
    %292 = arith.mulf %289, %291 : vector<8x8xf32>
    %293 = vector.extract_strided_slice %3 {offsets = [30, 0], sizes = [1, 8], strides = [1, 1]} : vector<32x8xf32> to vector<1x8xf32>
    %294 = vector.broadcast %293 : vector<1x8xf32> to vector<8x8xf32>
    %295 = arith.addf %292, %294 : vector<8x8xf32>
    %cst_70 = arith.constant dense<0.000000e+00> : vector<8xf32>
    %296 = vector.multi_reduction <add>, %295, %cst_70 [1] : vector<8x8xf32> to vector<8xf32>
    %297 = vector.shape_cast %296 : vector<8xf32> to vector<8x1xf32>
    %cst_71 = arith.constant 8.000000e+00 : f32
    %298 = vector.broadcast %cst_71 : f32 to vector<8x1xf32>
    %299 = arith.divf %297, %298 : vector<8x1xf32>
    %300 = vector.broadcast %299 : vector<8x1xf32> to vector<8x8xf32>
    %301 = arith.subf %295, %300 : vector<8x8xf32>
    %302 = arith.mulf %301, %301 : vector<8x8xf32>
    %cst_72 = arith.constant dense<0.000000e+00> : vector<8xf32>
    %303 = vector.multi_reduction <add>, %302, %cst_72 [1] : vector<8x8xf32> to vector<8xf32>
    %304 = vector.shape_cast %303 : vector<8xf32> to vector<8x1xf32>
    %cst_73 = arith.constant 8.000000e+00 : f32
    %305 = vector.broadcast %cst_73 : f32 to vector<8x1xf32>
    %306 = arith.divf %304, %305 : vector<8x1xf32>
    %307 = vector.broadcast %299 : vector<8x1xf32> to vector<8x8xf32>
    %308 = arith.subf %295, %307 : vector<8x8xf32>
    %cst_74 = arith.constant 9.99999974E-6 : f32
    %309 = vector.broadcast %cst_74 : f32 to vector<8x1xf32>
    %310 = arith.addf %306, %309 : vector<8x1xf32>
    %311 = math.rsqrt %310 : vector<8x1xf32>
    %312 = vector.broadcast %311 : vector<8x1xf32> to vector<8x8xf32>
    %313 = arith.mulf %308, %312 : vector<8x8xf32>
    %314 = vector.extract_strided_slice %3 {offsets = [24, 0], sizes = [1, 8], strides = [1, 1]} : vector<32x8xf32> to vector<1x8xf32>
    %315 = vector.broadcast %314 : vector<1x8xf32> to vector<8x8xf32>
    %316 = arith.mulf %313, %315 : vector<8x8xf32>
    %317 = vector.extract_strided_slice %3 {offsets = [31, 0], sizes = [1, 8], strides = [1, 1]} : vector<32x8xf32> to vector<1x8xf32>
    %318 = vector.broadcast %317 : vector<1x8xf32> to vector<8x8xf32>
    %319 = arith.addf %316, %318 : vector<8x8xf32>
    %320 = vector.extract_strided_slice %2 {offsets = [0, 128], sizes = [8, 8], strides = [1, 1]} : vector<8x136xf32> to vector<8x8xf32>
    %321 = vector.extract_strided_slice %3 {offsets = [17, 0], sizes = [1, 8], strides = [1, 1]} : vector<32x8xf32> to vector<1x8xf32>
    %cst_75 = arith.constant dense<0.000000e+00> : vector<8x8xf32>
    %322 = tpu.matmul %319, %320, %cst_75 {dimension_numbers = #tpu.dot_dimension_numbers<[1], [0], [0], [1], [0, 0, 1, 1], [], []>} : vector<8x8xf32>, vector<8x8xf32>, vector<8x8xf32> -> vector<8x8xf32>
    %323 = vector.broadcast %321 : vector<1x8xf32> to vector<8x8xf32>
    %324 = arith.addf %322, %323 : vector<8x8xf32>
    %cst_76 = arith.constant 0.000000e+00 : f32
    %325 = vector.broadcast %cst_76 : f32 to vector<8x8xf32>
    %326 = arith.subf %325, %324 : vector<8x8xf32>
    %327 = math.exp %326 : vector<8x8xf32>
    %cst_77 = arith.constant 1.000000e+00 : f32
    %328 = vector.broadcast %cst_77 : f32 to vector<8x8xf32>
    %329 = arith.addf %328, %327 : vector<8x8xf32>
    %330 = tpu.reciprocal %329 : vector<8x8xf32> -> vector<8x8xf32>
    %c0_78 = arith.constant 0 : index
    %c0_79 = arith.constant 0 : index
    %c0_80 = arith.constant 0 : index
    %331 = vector.load %arg5[%c0_78, %c0_79, %c0_80] : memref<1x8x8xf32, #tpu.memory_space<vmem>>, vector<1x8x8xf32>
    %332 = vector.shape_cast %331 : vector<1x8x8xf32> to vector<8x8xf32>
    %333 = vector.shape_cast %330 : vector<8x8xf32> to vector<1x8x8xf32>
    tpu.vector_store %arg5[%c0_78, %c0_79, %c0_80], %333 {strides = array<i32>} : memref<1x8x8xf32, #tpu.memory_space<vmem>>, vector<1x8x8xf32>,
    return
  }
  func.func @transform_0(%arg0: i32) -> (i32, i32, i32) {
    %c0_i32 = arith.constant 0 : i32
    %c0_i32_0 = arith.constant 0 : i32
    %c0_i32_1 = arith.constant 0 : i32
    return %arg0, %c0_i32, %c0_i32_0 : i32, i32, i32
  }
  func.func @transform_1(%arg0: i32) -> (i32, i32) {
    %c0_i32 = arith.constant 0 : i32
    %c0_i32_0 = arith.constant 0 : i32
    %c0_i32_1 = arith.constant 0 : i32
    return %c0_i32, %c0_i32_0 : i32, i32
  }
  func.func @transform_2(%arg0: i32) -> (i32, i32) {
    %c0_i32 = arith.constant 0 : i32
    %c0_i32_0 = arith.constant 0 : i32
    %c0_i32_1 = arith.constant 0 : i32
    return %c0_i32, %c0_i32_0 : i32, i32
  }
  func.func @transform_3(%arg0: i32) -> (i32, i32) {
    %c0_i32 = arith.constant 0 : i32
    %c0_i32_0 = arith.constant 0 : i32
    %c0_i32_1 = arith.constant 0 : i32
    return %c0_i32, %c0_i32_0 : i32, i32
  }
  func.func @transform_4(%arg0: i32) -> (i32, i32, i32) {
    %c0_i32 = arith.constant 0 : i32
    %c0_i32_0 = arith.constant 0 : i32
    %c0_i32_1 = arith.constant 0 : i32
    return %arg0, %c0_i32, %c0_i32_0 : i32, i32, i32
  }
}

</mosaic_0001>

<bundles_post_ra>
// kernel: model_forward.1
= control target key start
LH: loop header
LB: loop body
LE: loop exit
PB: predicated region body
PF: predicated region fallthrough
CT: control target
= control target key end

     0   :  { %s2374_s15 = smov 0   ;;  %s2695_s0 = inlined_call_operand.vmem [shape: f32[2,8,128], index: 0, kind: input, shape index: {}]   ;;  %s2696_s1 = inlined_call_operand.vmem [shape: f32[128,8], index: 1, kind: input, shape index: {}]   ;;  %s2697_s2 = inlined_call_operand.vmem [shape: f32[8,136], index: 2, kind: input, shape index: {}]   ;;  %s2698_s3 = inlined_call_operand.vmem [shape: f32[32,8], index: 3, kind: input, shape index: {}]   ;;  %s2699_s4 = inlined_call_operand.vmem [shape: f32[2,8,8], index: 4, kind: output, shape index: {}]  }
   0x1 LB: > { %s2031_s16 = sadd.s32 4294967295, %s2332_s15   ;;  %p2035_p0 = scmp.ge.s32.totalorder %s2332_s15, 1  ;;  %s2332_s15 = sphi %s2374_s15, %s14_s15  }
   0x2   : > { %p161_p1 = scmp.lt.s32.totalorder %s2332_s15, 3 }
   0x4   : > { %p162_p2 = pnand %p2035_p0, %p161_p1 }
   0x5   : > { %v200_v0 = vld [vmem:[%s2696_s1] sm:$0xff] (!%p162_p2)  ;;  %v201_v1 = vld [vmem:[%s2696_s1 + $0x8] sm:$0xff] (!%p162_p2)  ;;  %v202_v2 = vld [vmem:[%s2696_s1 + $0x10] sm:$0xff] (!%p162_p2)  ;;  %v2334_v3 = vmov (!%p162_p2), 0.0|0.0   ;;  %vm2335_vm0 = vmmov (!%p162_p2), 0   ;;  %v2336_v6 = vmov (!%p162_p2), 0.0   ;;  %v216_v28 = vlaneseq (!%p162_p2) }
   0x6   : > { %165 = sbr.rel (%p162_p2) target bundleno = 6515 (0x1973), region = 36  ;;  %2241 = vmatprep.subr.bf16.mxu0 (!%p162_p2), %v2334_v3  ;;  %v2242_v4 = vpack.c.bf16 (!%p162_p2), %v201_v1, %v200_v0  ;;  %v203_v5 = vld [vmem:[%s2696_s1 + $0x18] sm:$0xff] (!%p162_p2)  ;;  %2148 = vmatprep.mubr.msk.f32.mxu0 (!%p162_p2), %vm2335_vm0, %v2336_v6  ;;  %v204_v8 = vld [vmem:[%s2696_s1 + $0x20] sm:$0xff] (!%p162_p2)  ;;  %v205_v9 = vld [vmem:[%s2696_s1 + $0x28] sm:$0xff] (!%p162_p2)  ;;  %p185_p3 = scmp.lt.s32.totalorder (!%p162_p2), %s2031_s16, 1  ;;  %vm295_vm1 = vcmask (!%p162_p2), 64512  }
   0x7   : > { %2151 = vmatprep.subr.mxu1 (!%p162_p2), %v2336_v6  ;;  %2153 = vmatprep.mubr.msk.f32.mxu1 (!%p162_p2), %vm2335_vm0, %v2336_v6  ;;  %v2245_v7 = vpack.c.bf16 (!%p162_p2), %v203_v5, %v202_v2  ;;  %v2248_v10 = vpack.c.bf16 (!%p162_p2), %v205_v9, %v204_v8  ;;  %v206_v11 = vld [vmem:[%s2696_s1 + $0x30] sm:$0xff] (!%p162_p2)  ;;  %v207_v12 = vld [vmem:[%s2696_s1 + $0x38] sm:$0xff] (!%p162_p2)  ;;  %v208_v14 = vld [vmem:[%s2696_s1 + $0x40] sm:$0xff] (!%p162_p2)  ;;  %v2457_v29 = vshrl.u32 (!%p162_p2), %v216_v28, 7  ;;  %s2337_s7 = smov (!%p162_p2), 8   ;;  %s2338_s8 = smov (!%p162_p2), 120  }
   0x8   : > { %2243 = vmatpush3.bf16.msra.mxu0 (!%p162_p2), %v2242_v4  ;;  %v2251_v13 = vpack.c.bf16 (!%p162_p2), %v207_v12, %v206_v11  ;;  %v209_v15 = vld [vmem:[%s2696_s1 + $0x48] sm:$0xff] (!%p162_p2)  ;;  %v210_v17 = vld [vmem:[%s2696_s1 + $0x50] sm:$0xff] (!%p162_p2)  ;;  %v211_v18 = vld [vmem:[%s2696_s1 + $0x58] sm:$0xff] (!%p162_p2)  ;;  %s2339_s9 = smov (!%p162_p2), 16   ;;  %s2340_s10 = smov (!%p162_p2), 112  }
   0x9   : > { %2244 = vmatprep.subr.bf16.mxu0 (!%p162_p2), %v2334_v3  ;;  %v2254_v16 = vpack.c.bf16 (!%p162_p2), %v209_v15, %v208_v14  ;;  %v2257_v19 = vpack.c.bf16 (!%p162_p2), %v211_v18, %v210_v17  ;;  %v212_v20 = vld [vmem:[%s2696_s1 + $0x60] sm:$0xff] (!%p162_p2)  ;;  %v213_v21 = vld [vmem:[%s2696_s1 + $0x68] sm:$0xff] (!%p162_p2)  ;;  %v214_v23 = vld [vmem:[%s2696_s1 + $0x70] sm:$0xff] (!%p162_p2)  ;;  %v2460_v30 = vsub.s32 (!%p162_p2), 2, %v2457_v29  ;;  %v2471_v33 = vsub.s32 (!%p162_p2), 0, %v2457_v29  ;;  %s2341_s11 = smov (!%p162_p2), 104  }
   0xa   : > { %v2260_v22 = vpack.c.bf16 (!%p162_p2), %v213_v21, %v212_v20  ;;  %v215_v24 = vld [vmem:[%s2696_s1 + $0x78] sm:$0xff] (!%p162_p2)  ;;  %v2453_v27 = vld [vmem:[%s2697_s2] sm:$0xff] (!%p162_p2)  ;;  %v2483_v47 = vsub.s32 (!%p162_p2), 1, %v2457_v29  ;;  %v2494_v55 = vsub.s32 (!%p162_p2), 3, %v2457_v29  ;;  %v2511_v8 = vsub.s32 (!%p162_p2), 4, %v2457_v29  ;;  %s2342_s12 = smov (!%p162_p2), 32  }
   0xb   : > { %v2263_v25 = vpack.c.bf16 (!%p162_p2), %v215_v24, %v214_v23  ;;  %2152 = vmatpush3.msra.mxu1 (!%p162_p2), %v2453_v27  ;;  %v2465_v31 = vld [vmem:[%s2698_s3] sm:$0xff] (!%p162_p2)  ;;  %s2343_s13 = smov (!%p162_p2), 24   ;;  %s2344_s14 = smov (!%p162_p2), 96   ;;  %v2525_v24 = vld [vmem:[%s2698_s3 + $0x10] sm:$0xff] (!%p162_p2) }
   0xc   : > { %2246 = vmatpush3.bf16.msra.mxu0 (!%p162_p2), %v2245_v7  ;;  %2156 = vmatprep.subr.mxu1 (!%p162_p2), %v2336_v6  ;;  %v377_v32 = vrot.slane (!%p162_p2), %v2465_v31, %v2460_v30  ;;  %v219_v34 = vrot.slane (!%p162_p2), %v2465_v31, %v2471_v33  ;;  %v372_v48 = vrot.slane (!%p162_p2), %v2465_v31, %v2483_v47  ;;  %s2345_s23 = smov (!%p162_p2), 72   ;;  %s2346_s24 = smov (!%p162_p2), 56  }
   0xd   : > { %2247 = vmatprep.subr.bf16.mxu0 %v2334_v3  ;;  %s2701_s16 = smov (!%p185_p3, %s2031_s16), 1  ;;  %v386_v56 = vrot.slane %v2465_v31, %v2494_v55  ;;  %v562_v9 = vrot.slane %v2465_v31, %v2511_v8  ;;  %s2347_s26 = smov 64  }
   0xe   : > { %s2036_s25 = sshll.u32 %s2701_s16, 3  ;;  %379 = vrot.lane.b32.xlu0 %v377_v32, %s2337_s7  ;;  %s2348_s27 = smov 40  }
   0xf   : > { %s188_s28 = scalar_lea.vmem %s2695_s0, %s2036_s25  ;;  %s192_s6 = scalar_lea.vmem %s2699_s4, %s2036_s25 }
  0x10   : > { %2249 = vmatpush3.bf16.msra.mxu0 %v2248_v10  ;;  %v193_v26 = vld [vmem:[%s188_s28] sm:$0xff] }
  0x11   : > { %2250 = vmatprep.subr.bf16.mxu0 %v2334_v3 }
  0x14   : > { %2252 = vmatpush3.bf16.msra.mxu0 %v2251_v13 }
  0x15   : > { %2253 = vmatprep.subr.bf16.mxu0 %v2334_v3 }
  0x18   : > { %2255 = vmatpush3.bf16.msra.mxu0 %v2254_v16 }
  0x19   : > { %2256 = vmatprep.subr.bf16.mxu0 %v2334_v3 }
  0x1c   : > { %2258 = vmatpush3.bf16.msra.mxu0 %v2257_v19 }
  0x1d   : > { %2259 = vmatprep.subr.bf16.mxu0 %v2334_v3 }
  0x20   : > { %2261 = vmatpush3.bf16.msra.mxu0 %v2260_v22 }
  0x21   : > { %2262 = vmatprep.subr.bf16.mxu0 %v2334_v3 }
  0x24   : > { %2264 = vmatpush3.bf16.msra.mxu0 %v2263_v25  ;;  %v2530_v25 = vld [vmem:[%s2698_s3 + $0x18] sm:$0xff] }
  0x25   : > { %2196 = vmatprep.subr.mxu0 %v2336_v6 }
  0x27   : > { %2149 = vmatmul.mubr.f32.vlgmr.msra.gmra.mrb[0].mxu0 %v193_v26  ;;  %v658_v26 = vrot.slane %v2525_v24, %v2460_v30 }
  0x28   : > { %2198 = vmatprep.mubr.msk.f32.mxu0 %vm2335_vm0, %v2336_v6 }
  0x80   : > { %v380_v43 = vpop.permute.xlu0 %379 }
  0xfa   : > { %v286_v35 = vpop.f32.mrb[0].mxu0 }
  0xfb   : > { %v287_v36 = vadd.f32 %v286_v35, %v219_v34  ;;  %v2150_v37 = vpop.f32.mrb[1].mxu0  ;;  %v663_v34 = vrot.slane %v2530_v25, %v2483_v47 }
  0xfd   : > { %v290_v38 = vsub.f32 0.0, %v287_v36 }
  0xff   : > { %v291_v39 = vmul.f32 1.442695, %v290_v38  ;;  %v2541_v38 = vsub.s32 7, %v2457_v29 }
 0x101   : > { %2288 = vpow2.f32 %v291_v39  ;;  %v2544_v39 = vsub.s32 6, %v2457_v29 }
 0x10b   : > { %v2289_v40 = vpop.eup %2288 }
 0x10c   : > { %v293_v41 = vadd.f32 1.0, %v2289_v40  ;;  %v967_v40 = vrot.slane %v2465_v31, %v2541_v38 }
 0x10e   : > { %2290 = vrcp.f32 %v293_v41  ;;  %v958_v41 = vrot.slane %v2465_v31, %v2544_v39 }
 0x118   : > { %v2475_v42 = vpop.eup %2290 }
 0x119   : > { %2154 = vmatmul.mubr.msk.f32.vlgmr.msra.gmra.mrb[0].mxu1 %vm295_vm1, %v2475_v42 }
 0x11a   : > { %2158 = vmatprep.mubr.msk.f32.mxu1 %vm2335_vm0, %v2336_v6 }
 0x1ec   : > { %v365_v44 = vpop.f32.mrb[0].mxu1 }
 0x1ed   : > { %v382_v45 = vadd.f32 %v380_v43, %v365_v44  ;;  %v2155_v46 = vpop.f32.mrb[1].mxu1  ;;  %v373_v50 = vadd.f32 %v372_v48, %v365_v44  ;;  %v2553_v43 = vsub.s32 5, %v2457_v29 }
 0x1ef   : > { %393 = vrot.lane.b32.xlu0 %v382_v45, %s2338_s8 }
 0x261   : > { %v394_v49 = vpop.permute.xlu0 %393 }
 0x262   : > { %2157 = vmatpush3.xpose.msk.msra.mxu1 %vm295_vm1, %v394_v49 }
 0x263   : > { %2161 = vmatprep.subr.mxu1 %v2336_v6 }
 0x265   : > { %2159 = vmatmul.mubr.msk.f32.vlgmr.msra.gmra.mrb[2].mxu1 %vm295_vm1, %v373_v50 }
 0x266   : > { %2163 = vmatprep.mubr.msk.f32.mxu1 %vm2335_vm0, %v2336_v6 }
 0x338   : > { %v466_v51 = vpop.f32.mrb[2].mxu1 }
 0x339   : > { %v470_v52 = vmul.f32 0.35355338, %v466_v51  ;;  %v2160_v53 = vpop.f32.mrb[3].mxu1 }
 0x33b   : > { %v471_v54 = vsel %vm295_vm1, %v470_v52, -inf }
 0x33c   : > { %472 = vmax.xlane.f32.xlu1 %v471_v54 }
 0x34d   : > { %388 = vrot.lane.b32.xlu1 %v386_v56, %s2339_s9 }
 0x3c9   : > { %v473_v57 = vpop.xlane.xlu1 %472 }
 0x3ca   : > { %v474_v58 = vsub.f32 %v470_v52, %v473_v57 }
 0x3cc   : > { %v475_v59 = vmul.f32 1.442695, %v474_v58 }
 0x3cd   : > { %v389_v60 = vpop.permute.xlu1 %388 }
 0x3ce   : > { %2292 = vpow2.f32 %v475_v59  ;;  %v391_v61 = vadd.f32 %v389_v60, %v365_v44  ;;  %v2558_v44 = vld [vmem:[%s2698_s3 + $0x8] sm:$0xff] }
 0x3cf   : > { %v668_v45 = vrot.slane %v2558_v44, %v2553_v43 }
 0x3d0   : > { %483 = vrot.lane.b32.xlu1 %v391_v61, %s2340_s10  ;;  %v953_v61 = vrot.slane %v2465_v31, %v2553_v43  ;;  %v753_v31 = vrot.slane %v2558_v44, %v2544_v39 }
 0x3d4   : > { %564 = vrot.lane.b32.xlu1 %v2453_v27, %s2341_s11 }
 0x3d8   : > { %v2293_v62 = vpop.eup %2292 }
 0x3d9   : > { %v477_v63 = vsel %vm295_vm1, %v2293_v62, 0.0 }
 0x3da   : > { %478 = vadd.xlane.f32.xlu0 %v477_v63 }
 0x442   : > { %v484_v0 = vpop.permute.xlu1 %483 }
 0x443   : > { %2162 = vmatpush3.msra.mxu1 %v484_v0 }
 0x444   : > { %2166 = vmatprep.subr.mxu1 %v2336_v6 }
 0x446   : > { %v565_v4 = vpop.permute.xlu1 %564 }
 0x467   : > { %v479_v1 = vpop.xlane.xlu0 %478 }
 0x468   : > { %2294 = vrcp.f32 %v479_v1 }
 0x472   : > { %v2295_v2 = vpop.eup %2294 }
 0x473   : > { %v481_v3 = vmul.f32 %v2295_v2, %v2293_v62 }
 0x475   : > { %2164 = vmatmul.mubr.msk.f32.vlgmr.msra.gmra.mrb[4].mxu1 %vm295_vm1, %v481_v3 }
 0x476   : > { %2167 = vmatpush3.msra.mxu1 %v565_v4  ;;  %2168 = vmatprep.mubr.msk.f32.mxu1 %vm2335_vm0, %v2336_v6 }
 0x477   : > { %2171 = vmatprep.subr.mxu1 %v2336_v6 }
 0x548   : > { %v555_v5 = vpop.f32.mrb[4].mxu1 }
 0x549   : > { %v2165_v7 = vpop.f32.mrb[5].mxu1  ;;  %2169 = vmatmul.mubr.msk.f32.vlgmr.msra.gmra.mrb[6].mxu1 %vm295_vm1, %v555_v5 }
 0x54a   : > { %2173 = vmatprep.mubr.msk.f32.mxu1 %vm2335_vm0, %v2336_v6 }
 0x61c   : > { %v636_v10 = vpop.f32.mrb[6].mxu1 }
 0x61d   : > { %v637_v11 = vadd.f32 %v636_v10, %v562_v9  ;;  %v2170_v12 = vpop.f32.mrb[7].mxu1 }
 0x61f   : > { %v640_v13 = vadd.f32 %v2475_v42, %v637_v11 }
 0x621   : > { %v641_v14 = vsel %vm295_vm1, %v640_v13, 0.0 }
 0x622   : > { %642 = vadd.xlane.f32.xlu1 %v641_v14 }
 0x633   : > { %877 = vrot.lane.b32.xlu1 %v2453_v27, %s2344_s14 }
 0x637   : > { %969 = vrot.lane.b32.xlu1 %v967_v40, %s2339_s9 }
 0x6af   : > { %v643_v15 = vpop.xlane.xlu1 %642 }
 0x6b0   : > { %v645_v16 = vmul.f32 0.125, %v643_v15 }
 0x6b2   : > { %v646_v17 = vsub.f32 %v640_v13, %v645_v16 }
 0x6b3   : > { %v878_v53 = vpop.permute.xlu1 %877 }
 0x6b4   : > { %v647_v18 = vmul.f32 %v646_v17, %v646_v17 }
 0x6b6   : > { %v648_v19 = vsel %vm295_vm1, %v647_v18, 0.0 }
 0x6b7   : > { %649 = vadd.xlane.f32.xlu0 %v648_v19  ;;  %v970_v4 = vpop.permute.xlu1 %969 }
 0x6cd   : > { %669 = vrot.lane.b32.xlu0 %v2453_v27, %s2342_s12 }
 0x6d1   : > { %754 = vrot.lane.b32.xlu0 %v2453_v27, %s2343_s13 }
 0x6d5   : > { %960 = vrot.lane.b32.xlu0 %v958_v41, %s2337_s7  ;;  %v852_v41 = vrot.slane %v2530_v25, %v2460_v30 }
 0x744   : > { %v650_v20 = vpop.xlane.xlu0 %649 }
 0x745   : > { %v651_v21 = vmul.f32 0.125, %v650_v20 }
 0x747   : > { %v652_v22 = vadd.f32 1e-05, %v651_v21 }
 0x748   : > { %v670_v23 = vpop.permute.xlu0 %669 }
 0x749   : > { %2296 = vrsqrt.f32 %v652_v22  ;;  %2172 = vmatpush3.msra.mxu1 %v670_v23 }
 0x74a   : > { %2176 = vmatprep.subr.mxu1 %v2336_v6 }
 0x74c   : > { %v755_v37 = vpop.permute.xlu0 %754 }
 0x750   : > { %v961_v57 = vpop.permute.xlu0 %960 }
 0x753   : > { %v2297_v28 = vpop.eup %2296 }
 0x754   : > { %v654_v32 = vmul.f32 %v2297_v28, %v646_v17 }
 0x756   : > { %v659_v35 = vmul.f32 %v658_v26, %v654_v32 }
 0x758   : > { %v664_v36 = vadd.f32 %v663_v34, %v659_v35 }
 0x75a   : > { %2174 = vmatmul.mubr.msk.f32.vlgmr.msra.gmra.mrb[8].mxu1 %vm295_vm1, %v664_v36 }
 0x75b   : > { %2178 = vmatprep.mubr.msk.f32.mxu1 %vm2335_vm0, %v2336_v6  ;;  %2177 = vmatpush3.msra.mxu1 %v755_v37 }
 0x75c   : > { %2181 = vmatprep.subr.mxu1 %v2336_v6 }
 0x82d   : > { %v741_v46 = vpop.f32.mrb[8].mxu1 }
 0x82e   : > { %v742_v48 = vadd.f32 %v741_v46, %v668_v45  ;;  %v2175_v49 = vpop.f32.mrb[9].mxu1 }
 0x830   : > { %v746_v50 = vmul.f32 1.442695, %v742_v48  ;;  %vm745_vm2 = vcmp.gt.f32.partialorder %v742_v48, 0.0 }
 0x832   : > { %2298 = vpow2.f32 %v746_v50 }
 0x83c   : > { %v2299_v51 = vpop.eup %2298 }
 0x83d   : > { %v2044_v52 = vadd.f32 -1.0, %v2299_v51 }
 0x83f   : > { %v749_v54 = vsel %vm745_vm2, %v742_v48, %v2044_v52 }
 0x840   : > { %2179 = vmatmul.mubr.msk.f32.vlgmr.msra.gmra.mrb[10].mxu1 %vm295_vm1, %v749_v54 }
 0x841   : > { %2182 = vmatpush3.msra.mxu1 %v878_v53  ;;  %2183 = vmatprep.mubr.msk.f32.mxu1 %vm2335_vm0, %v2336_v6  ;;  %v1143_v53 = vrot.slane %v2558_v44, %v2471_v33 }
 0x842   : > { %2186 = vmatprep.subr.mxu1 %v2336_v6 }
 0x844   : > { %2184 = vmatmul.mubr.msk.f32.vlgmr.msra.gmra.mrb[12].mxu1 %vm295_vm1, %v2475_v42 }
 0x845   : > { %2188 = vmatprep.mubr.msk.f32.mxu1 %vm2335_vm0, %v2336_v6 }
 0x913   : > { %v826_v29 = vpop.f32.mrb[10].mxu1 }
 0x914   : > { %v2180_v56 = vpop.f32.mrb[11].mxu1  ;;  %v827_v7 = vadd.f32 %v826_v29, %v753_v31  ;;  %v870_v31 = vrot.slane %v2525_v24, %v2511_v8 }
 0x916   : > { %v830_v9 = vadd.f32 %v827_v7, %v664_v36  ;;  %v847_v36 = vrot.slane %v2525_v24, %v2494_v55 }
 0x917   : > { %v946_v58 = vpop.f32.mrb[12].mxu1 }
 0x918   : > { %v963_v59 = vadd.f32 %v961_v57, %v946_v58  ;;  %v2185_v60 = vpop.f32.mrb[13].mxu1  ;;  %v954_v63 = vadd.f32 %v953_v61, %v946_v58  ;;  %v972_v5 = vadd.f32 %v970_v4, %v946_v58  ;;  %v831_v10 = vsel %vm295_vm1, %v830_v9, 0.0 }
 0x91a   : > { %974 = vrot.lane.b32.xlu0 %v963_v59, %s2338_s8 }
 0x98c   : > { %v975_v62 = vpop.permute.xlu0 %974 }
 0x98d   : > { %2187 = vmatpush3.xpose.msk.msra.mxu1 %vm295_vm1, %v975_v62 }
 0x98e   : > { %2191 = vmatprep.subr.mxu1 %v2336_v6 }
 0x990   : > { %2189 = vmatmul.mubr.msk.f32.vlgmr.msra.gmra.mrb[14].mxu1 %vm295_vm1, %v954_v63 }
 0x991   : > { %2193 = vmatprep.mubr.msk.f32.mxu1 %vm2335_vm0, %v2336_v6 }
 0xa63   : > { %v1047_v0 = vpop.f32.mrb[14].mxu1 }
 0xa64   : > { %v1051_v1 = vmul.f32 0.35355338, %v1047_v0  ;;  %v2190_v2 = vpop.f32.mrb[15].mxu1 }
 0xa66   : > { %v1052_v3 = vsel %vm295_vm1, %v1051_v1, -inf }
 0xa67   : > { %1053 = vmax.xlane.f32.xlu0 %v1052_v3 }
 0xa7d   : > { %1064 = vrot.lane.b32.xlu0 %v972_v5, %s2340_s10 }
 0xa9c   : > { %832 = vadd.xlane.f32.xlu0 %v831_v10  ;;  %v875_v10 = vrot.slane %v2530_v25, %v2494_v55 }
 0xaf4   : > { %v1054_v11 = vpop.xlane.xlu0 %1053 }
 0xaf5   : > { %v1055_v12 = vsub.f32 %v1051_v1, %v1054_v11 }
 0xaf7   : > { %v1056_v13 = vmul.f32 1.442695, %v1055_v12 }
 0xaf8   : > { %v1065_v14 = vpop.permute.xlu0 %1064 }
 0xaf9   : > { %2300 = vpow2.f32 %v1056_v13  ;;  %2192 = vmatpush3.msra.mxu1 %v1065_v14  ;;  %v1408_v13 = vrot.slane %v2558_v44, %v2494_v55 }
 0xafa   : > { %2201 = vmatprep.subr.mxu1 %v2336_v6 }
 0xb03   : > { %v2301_v15 = vpop.eup %2300 }
 0xb04   : > { %v1058_v16 = vsel %vm295_vm1, %v2301_v15, 0.0 }
 0xb05   : > { %1059 = vadd.xlane.f32.xlu1 %v1058_v16 }
 0xb16   : > { %1144 = vrot.lane.b32.xlu1 %v2453_v27, %s2345_s23 }
 0xb29   : > { %v833_v17 = vpop.xlane.xlu0 %832 }
 0xb2a   : > { %v834_v18 = vmul.f32 0.125, %v833_v17 }
 0xb2c   : > { %v835_v19 = vsub.f32 %v830_v9, %v834_v18  ;;  %v1237_v18 = vrot.slane %v2525_v24, %v2553_v43 }
 0xb2e   : > { %v836_v20 = vmul.f32 %v835_v19, %v835_v19 }
 0xb30   : > { %v837_v21 = vsel %vm295_vm1, %v836_v20, 0.0 }
 0xb3a   : > { %838 = vadd.xlane.f32.xlu1 %v837_v21  ;;  %v1242_v21 = vrot.slane %v2530_v25, %v2511_v8 }
 0xb4b   : > { %1324 = vrot.lane.b32.xlu1 %v2453_v27, %s2346_s24 }
 0xb92   : > { %v1060_v22 = vpop.xlane.xlu1 %1059 }
 0xb93   : > { %2302 = vrcp.f32 %v1060_v22 }
 0xb96   : > { %v1145_v23 = vpop.permute.xlu1 %1144 }
 0xb97   : > { %2197 = vmatpush3.msra.mxu0 %v1145_v23  ;;  %v1403_v23 = vrot.slane %v2558_v44, %v2460_v30 }
 0xb98   : > { %2206 = vmatprep.subr.mxu0 %v2336_v6 }
 0xb9d   : > { %v2303_v26 = vpop.eup %2302 }
 0xb9e   : > { %v1062_v28 = vmul.f32 %v2303_v26, %v2301_v15 }
 0xba0   : > { %2194 = vmatmul.mubr.msk.f32.vlgmr.msra.gmra.mrb[16].mxu1 %vm295_vm1, %v1062_v28 }
 0xba1   : > { %2203 = vmatprep.mubr.msk.f32.mxu1 %vm2335_vm0, %v2336_v6 }
 0xbc7   : > { %v839_v32 = vpop.xlane.xlu1 %838 }
 0xbc8   : > { %v840_v34 = vmul.f32 0.125, %v839_v32 }
 0xbca   : > { %v841_v35 = vadd.f32 1e-05, %v840_v34  ;;  %v1247_v34 = vrot.slane %v2558_v44, %v2483_v47 }
 0xbcb   : > { %v1325_v62 = vpop.permute.xlu1 %1324 }
 0xbcc   : > { %2304 = vrsqrt.f32 %v841_v35 }
 0xbd6   : > { %v2305_v37 = vpop.eup %2304 }
 0xbd7   : > { %v843_v40 = vmul.f32 %v2305_v37, %v835_v19 }
 0xbd9   : > { %v848_v45 = vmul.f32 %v847_v36, %v843_v40 }
 0xbdb   : > { %v853_v46 = vadd.f32 %v852_v41, %v848_v45 }
 0xbdd   : > { %v854_v48 = vsel %vm295_vm1, %v853_v46, 0.0 }
 0xbde   : > { %855 = vadd.xlane.f32.xlu0 %v854_v48 }
 0xc6b   : > { %v856_v51 = vpop.xlane.xlu0 %855 }
 0xc6c   : > { %v857_v52 = vmul.f32 0.125, %v856_v51 }
 0xc6e   : > { %v858_v29 = vsub.f32 %v853_v46, %v857_v52 }
 0xc70   : > { %v859_v60 = vmul.f32 %v858_v29, %v858_v29 }
 0xc72   : > { %v860_v61 = vsel %vm295_vm1, %v859_v60, 0.0 }
 0xc73   : > { %v1136_v49 = vpop.f32.mrb[16].mxu1 }
 0xc74   : > { %v2195_v50 = vpop.f32.mrb[17].mxu1  ;;  %2199 = vmatmul.mubr.msk.f32.vlgmr.msra.gmra.mrb[2].mxu0 %vm295_vm1, %v1136_v49 }
 0xc75   : > { %2208 = vmatprep.mubr.msk.f32.mxu0 %vm2335_vm0, %v2336_v6  ;;  %2207 = vmatpush3.msra.mxu0 %v1325_v62 }
 0xc76   : > { %2216 = vmatprep.subr.mxu0 %v2336_v6 }
 0xd47   : > { %v1216_v54 = vpop.f32.mrb[2].mxu0 }
 0xd48   : > { %v1217_v56 = vadd.f32 %v1216_v54, %v1143_v53  ;;  %v2200_v57 = vpop.f32.mrb[3].mxu0 }
 0xd4a   : > { %v1220_v58 = vadd.f32 %v2475_v42, %v1217_v56 }
 0xd4c   : > { %v1221_v59 = vsel %vm295_vm1, %v1220_v58, 0.0 }
 0xd4d   : > { %1222 = vadd.xlane.f32.xlu0 %v1221_v59 }
 0xd51   : > { %861 = vadd.xlane.f32.xlu0 %v860_v61  ;;  %v1582_v61 = vrot.slane %v2558_v44, %v2511_v8 }
 0xdda   : > { %v1223_v63 = vpop.xlane.xlu0 %1222 }
 0xddb   : > { %v1224_v0 = vmul.f32 0.125, %v1223_v63 }
 0xddd   : > { %v1225_v1 = vsub.f32 %v1220_v58, %v1224_v0 }
 0xdde   : > { %v862_v2 = vpop.xlane.xlu0 %861 }
 0xddf   : > { %v863_v3 = vmul.f32 0.125, %v862_v2  ;;  %v1226_v4 = vmul.f32 %v1225_v1, %v1225_v1 }
 0xde1   : > { %v864_v5 = vadd.f32 1e-05, %v863_v3  ;;  %v1227_v42 = vsel %vm295_vm1, %v1226_v4, 0.0 }
 0xde2   : > { %1228 = vadd.xlane.f32.xlu0 %v1227_v42 }
 0xde3   : > { %2306 = vrsqrt.f32 %v864_v5 }
 0xded   : > { %v2307_v7 = vpop.eup %2306 }
 0xdee   : > { %v866_v9 = vmul.f32 %v2307_v7, %v858_v29 }
 0xdf0   : > { %v871_v11 = vmul.f32 %v870_v31, %v866_v9 }
 0xdf2   : > { %v876_v12 = vadd.f32 %v875_v10, %v871_v11  ;;  %v1676_v11 = vrot.slane %v2525_v24, %v2544_v39 }
 0xdf4   : > { %2209 = vmatmul.mubr.msk.f32.vlgmr.msra.gmra.mrb[4].mxu0 %vm295_vm1, %v876_v12 }
 0xdf5   : > { %2218 = vmatprep.mubr.msk.f32.mxu0 %vm2335_vm0, %v2336_v6 }
 0xdf8   : > { %1248 = vrot.lane.b32.xlu0 %v2453_v27, %s2347_s26 }
 0xdfc   : > { %1410 = vrot.lane.b32.xlu0 %v1408_v13, %s2337_s7 }
 0xe6f   : > { %v1229_v14 = vpop.xlane.xlu0 %1228 }
 0xe70   : > { %v1230_v15 = vmul.f32 0.125, %v1229_v14  ;;  %v1681_v14 = vrot.slane %v2530_v25, %v2553_v43 }
 0xe72   : > { %v1231_v16 = vadd.f32 1e-05, %v1230_v15 }
 0xe73   : > { %v1249_v17 = vpop.permute.xlu0 %1248 }
 0xe74   : > { %2308 = vrsqrt.f32 %v1231_v16  ;;  %2202 = vmatpush3.msra.mxu1 %v1249_v17  ;;  %v1686_v17 = vrot.slane %v2558_v44, %v2541_v38 }
 0xe75   : > { %2211 = vmatprep.subr.mxu1 %v2336_v6 }
 0xe77   : > { %v1411_v46 = vpop.permute.xlu0 %1410 }
 0xe7e   : > { %v2309_v19 = vpop.eup %2308 }
 0xe7f   : > { %v1233_v20 = vmul.f32 %v2309_v19, %v1225_v1 }
 0xe81   : > { %v1238_v22 = vmul.f32 %v1237_v18, %v1233_v20 }
 0xe83   : > { %v1243_v55 = vadd.f32 %v1242_v21, %v1238_v22 }
 0xe85   : > { %2204 = vmatmul.mubr.msk.f32.vlgmr.msra.gmra.mrb[18].mxu1 %vm295_vm1, %v1243_v55 }
 0xe86   : > { %2213 = vmatprep.mubr.msk.f32.mxu1 %vm2335_vm0, %v2336_v6 }
 0xec7   : > { %v1396_v26 = vpop.f32.mrb[4].mxu0 }
 0xec8   : > { %v1404_v28 = vadd.f32 %v1403_v23, %v1396_v26  ;;  %v2210_v32 = vpop.f32.mrb[5].mxu0  ;;  %v1413_v48 = vadd.f32 %v1411_v46, %v1396_v26  ;;  %v1771_v23 = vrot.slane %v2525_v24, %v2471_v33  ;;  %v1865_v46 = vrot.slane %v2525_v24, %v2541_v38 }
 0xeca   : > { %2212 = vmatpush3.xpose.msk.msra.mxu1 %vm295_vm1, %v1404_v28 }
 0xecb   : > { %2221 = vmatprep.subr.mxu1 %v2336_v6 }
 0xf58   : > { %v1320_v35 = vpop.f32.mrb[18].mxu1 }
 0xf59   : > { %v1321_v36 = vadd.f32 %v1320_v35, %v1247_v34  ;;  %v2205_v37 = vpop.f32.mrb[19].mxu1 }
 0xf5b   : > { %2214 = vmatmul.mubr.msk.f32.vlgmr.msra.gmra.mrb[20].mxu1 %vm295_vm1, %v1321_v36 }
 0xf5c   : > { %2223 = vmatprep.mubr.msk.f32.mxu1 %vm2335_vm0, %v2336_v6 }
0x102e   : > { %v1486_v40 = vpop.f32.mrb[20].mxu1 }
0x102f   : > { %v1490_v30 = vmul.f32 0.35355338, %v1486_v40  ;;  %v2215_v41 = vpop.f32.mrb[21].mxu1 }
0x1031   : > { %v1491_v45 = vsel %vm295_vm1, %v1490_v30, -inf }
0x1032   : > { %1492 = vmax.xlane.f32.xlu1 %v1491_v45 }
0x1043   : > { %1503 = vrot.lane.b32.xlu1 %v1413_v48, %s2338_s8 }
0x10bf   : > { %v1493_v49 = vpop.xlane.xlu1 %1492 }
0x10c0   : > { %v1494_v50 = vsub.f32 %v1490_v30, %v1493_v49 }
0x10c2   : > { %v1495_v51 = vmul.f32 1.442695, %v1494_v50  ;;  %v1870_v50 = vrot.slane %v2530_v25, %v2544_v39 }
0x10c3   : > { %v1504_v52 = vpop.permute.xlu1 %1503 }
0x10c4   : > { %2310 = vpow2.f32 %v1495_v51  ;;  %2217 = vmatpush3.msra.mxu0 %v1504_v52 }
0x10c5   : > { %2226 = vmatprep.subr.mxu0 %v2336_v6 }
0x10ce   : > { %v2311_v53 = vpop.eup %2310 }
0x10cf   : > { %v1497_v54 = vsel %vm295_vm1, %v2311_v53, 0.0 }
0x10d0   : > { %1498 = vadd.xlane.f32.xlu0 %v1497_v54 }
0x10e6   : > { %1583 = vrot.lane.b32.xlu0 %v2453_v27, %s2348_s27 }
0x115d   : > { %v1499_v29 = vpop.xlane.xlu0 %1498 }
0x115e   : > { %2312 = vrcp.f32 %v1499_v29 }
0x1161   : > { %v1584_v56 = vpop.permute.xlu0 %1583 }
0x1162   : > { %2222 = vmatpush3.msra.mxu1 %v1584_v56 }
0x1163   : > { %2231 = vmatprep.subr.mxu1 %v2336_v6 }
0x1168   : > { %v2313_v57 = vpop.eup %2312 }
0x1169   : > { %v1501_v58 = vmul.f32 %v2313_v57, %v2311_v53 }
0x116b   : > { %2219 = vmatmul.mubr.msk.f32.vlgmr.msra.gmra.mrb[6].mxu0 %vm295_vm1, %v1501_v58 }
0x116c   : > { %2228 = vmatprep.mubr.msk.f32.mxu0 %vm2335_vm0, %v2336_v6 }
0x123e   : > { %v1575_v59 = vpop.f32.mrb[6].mxu0 }
0x123f   : > { %v2220_v60 = vpop.f32.mrb[7].mxu0  ;;  %2224 = vmatmul.mubr.msk.f32.vlgmr.msra.gmra.mrb[22].mxu1 %vm295_vm1, %v1575_v59  ;;  %v195_v59 = vld [vmem:[%s2697_s2 + $0x8] sm:$0xff] }
0x1240   : > { %2233 = vmatprep.mubr.msk.f32.mxu1 %vm2335_vm0, %v2336_v6 }
0x1312   : > { %v1655_v62 = vpop.f32.mrb[22].mxu1 }
0x1313   : > { %v1656_v63 = vadd.f32 %v1655_v62, %v1582_v61  ;;  %v2225_v0 = vpop.f32.mrb[23].mxu1  ;;  %v1888_v62 = vrot.slane %v2530_v25, %v2471_v33 }
0x1315   : > { %v1659_v1 = vadd.f32 %v1656_v63, %v1243_v55 }
0x1317   : > { %v1660_v2 = vsel %vm295_vm1, %v1659_v1, 0.0 }
0x1318   : > { %1661 = vadd.xlane.f32.xlu1 %v1660_v2 }
0x1329   : > { %1687 = vrot.lane.b32.xlu1 %v2453_v27, %s2339_s9 }
0x13a5   : > { %v1662_v3 = vpop.xlane.xlu1 %1661 }
0x13a6   : > { %v1663_v4 = vmul.f32 0.125, %v1662_v3 }
0x13a8   : > { %v1664_v5 = vsub.f32 %v1659_v1, %v1663_v4  ;;  %v1893_v1 = vrot.slane %v2530_v25, %v2541_v38  ;;  %v1898_v4 = vrot.slane %v2525_v24, %v2483_v47 }
0x13a9   : > { %v1688_v8 = vpop.permute.xlu1 %1687 }
0x13aa   : > { %v1665_v42 = vmul.f32 %v1664_v5, %v1664_v5  ;;  %2227 = vmatpush3.msra.mxu0 %v1688_v8 }
0x13ab   : > { %2236 = vmatprep.subr.mxu0 %v2336_v6 }
0x13ac   : > { %v1666_v31 = vsel %vm295_vm1, %v1665_v42, 0.0 }
0x13ad   : > { %1667 = vadd.xlane.f32.xlu0 %v1666_v31 }
0x13c3   : > { %1772 = vrot.lane.b32.xlu0 %v2453_v27, %s2337_s7 }
0x143a   : > { %v1668_v7 = vpop.xlane.xlu0 %1667 }
0x143b   : > { %v1669_v9 = vmul.f32 0.125, %v1668_v7 }
0x143d   : > { %v1670_v10 = vadd.f32 1e-05, %v1669_v9 }
0x143e   : > { %v1773_v27 = vpop.permute.xlu0 %1772 }
0x143f   : > { %2314 = vrsqrt.f32 %v1670_v10  ;;  %2232 = vmatpush3.msra.mxu1 %v1773_v27 }
0x1449   : > { %v2315_v12 = vpop.eup %2314 }
0x144a   : > { %v1672_v13 = vmul.f32 %v2315_v12, %v1664_v5 }
0x144c   : > { %v1677_v15 = vmul.f32 %v1676_v11, %v1672_v13 }
0x144e   : > { %v1682_v16 = vadd.f32 %v1681_v14, %v1677_v15 }
0x1450   : > { %2229 = vmatmul.mubr.msk.f32.vlgmr.msra.gmra.mrb[8].mxu0 %vm295_vm1, %v1682_v16 }
0x1451   : > { %2238 = vmatprep.mubr.msk.f32.mxu0 %vm2335_vm0, %v2336_v6  ;;  %2237 = vmatpush3.msra.mxu0 %v195_v59 }
0x1523   : > { %v1759_v18 = vpop.f32.mrb[8].mxu0 }
0x1524   : > { %v1760_v19 = vadd.f32 %v1759_v18, %v1686_v17  ;;  %v2230_v20 = vpop.f32.mrb[9].mxu0 }
0x1526   : > { %v1764_v21 = vmul.f32 1.442695, %v1760_v19  ;;  %vm1763_vm3 = vcmp.gt.f32.partialorder %v1760_v19, 0.0 }
0x1528   : > { %2316 = vpow2.f32 %v1764_v21 }
0x1532   : > { %v2317_v22 = vpop.eup %2316 }
0x1533   : > { %v2058_v55 = vadd.f32 -1.0, %v2317_v22 }
0x1535   : > { %v1767_v43 = vsel %vm1763_vm3, %v1760_v19, %v2058_v55 }
0x1536   : > { %2234 = vmatmul.mubr.msk.f32.vlgmr.msra.gmra.mrb[24].mxu1 %vm295_vm1, %v1767_v43 }
0x1609   : > { %v1844_v6 = vpop.f32.mrb[24].mxu1 }
0x160a   : > { %v1845_v26 = vadd.f32 %v1844_v6, %v1771_v23  ;;  %v2235_v28 = vpop.f32.mrb[25].mxu1 }
0x160c   : > { %v1848_v32 = vadd.f32 %v1845_v26, %v1682_v16 }
0x160e   : > { %v1849_v44 = vsel %vm295_vm1, %v1848_v32, 0.0 }
0x160f   : > { %1850 = vadd.xlane.f32.xlu1 %v1849_v44 }
0x169c   : > { %v1851_v34 = vpop.xlane.xlu1 %1850 }
0x169d   : > { %v1852_v35 = vmul.f32 0.125, %v1851_v34 }
0x169f   : > { %v1853_v36 = vsub.f32 %v1848_v32, %v1852_v35 }
0x16a1   : > { %v1854_v37 = vmul.f32 %v1853_v36, %v1853_v36 }
0x16a3   : > { %v1855_v40 = vsel %vm295_vm1, %v1854_v37, 0.0 }
0x16a4   : > { %1856 = vadd.xlane.f32.xlu0 %v1855_v40 }
0x1731   : > { %v1857_v30 = vpop.xlane.xlu0 %1856 }
0x1732   : > { %v1858_v41 = vmul.f32 0.125, %v1857_v30 }
0x1734   : > { %v1859_v45 = vadd.f32 1e-05, %v1858_v41 }
0x1736   : > { %2318 = vrsqrt.f32 %v1859_v45 }
0x1740   : > { %v2319_v48 = vpop.eup %2318 }
0x1741   : > { %v1861_v49 = vmul.f32 %v2319_v48, %v1853_v36 }
0x1743   : > { %v1866_v51 = vmul.f32 %v1865_v46, %v1861_v49 }
0x1745   : > { %v1871_v52 = vadd.f32 %v1870_v50, %v1866_v51 }
0x1747   : > { %v1872_v53 = vsel %vm295_vm1, %v1871_v52, 0.0 }
0x1748   : > { %1873 = vadd.xlane.f32.xlu1 %v1872_v53 }
0x17d5   : > { %v1874_v54 = vpop.xlane.xlu1 %1873 }
0x17d6   : > { %v1875_v29 = vmul.f32 0.125, %v1874_v54 }
0x17d8   : > { %v1876_v56 = vsub.f32 %v1871_v52, %v1875_v29 }
0x17da   : > { %v1877_v57 = vmul.f32 %v1876_v56, %v1876_v56 }
0x17dc   : > { %v1878_v58 = vsel %vm295_vm1, %v1877_v57, 0.0 }
0x17dd   : > { %1879 = vadd.xlane.f32.xlu1 %v1878_v58 }
0x186a   : > { %v1880_v60 = vpop.xlane.xlu1 %1879 }
0x186b   : > { %v1881_v61 = vmul.f32 0.125, %v1880_v60 }
0x186d   : > { %v1882_v39 = vadd.f32 1e-05, %v1881_v61 }
0x186f   : > { %2320 = vrsqrt.f32 %v1882_v39 }
0x1879   : > { %v2321_v63 = vpop.eup %2320 }
0x187a   : > { %v1884_v0 = vmul.f32 %v2321_v63, %v1876_v56 }
0x187c   : > { %v1889_v2 = vmul.f32 %v1888_v62, %v1884_v0 }
0x187e   : > { %v1894_v3 = vadd.f32 %v1893_v1, %v1889_v2 }
0x1880   : > { %2239 = vmatmul.mubr.msk.f32.vlgmr.msra.gmra.mrb[10].mxu0 %vm295_vm1, %v1894_v3 }
0x1953   : > { %v1968_v5 = vpop.f32.mrb[10].mxu0 }
0x1954   : > { %v1969_v42 = vadd.f32 %v1968_v5, %v1898_v4  ;;  %v2240_v31 = vpop.f32.mrb[11].mxu0 }
0x1956   : > { %v1972_v8 = vsub.f32 0.0, %v1969_v42 }
0x1958   : > { %v1973_v7 = vmul.f32 1.442695, %v1972_v8 }
0x195a   : > { %2322 = vpow2.f32 %v1973_v7 }
0x1964   : > { %v2323_v33 = vpop.eup %2322 }
0x1965   : > { %v1975_v9 = vadd.f32 1.0, %v2323_v33 }
0x1967   : > { %2324 = vrcp.f32 %v1975_v9 }
0x1971   : > { %v2325_v25 = vpop.eup %2324 }
0x1972   : > { %1977 = vst.msk [vmem:[%s192_s6] sm:$0xff] %vm295_vm1, %v2325_v25 }
0x1973 PF: > { %s14_s15 = sadd.s32 1, %s2332_s15  }
0x1974   : > { %p11_p4 = scmp.ge.s32.totalorder %s14_s15, 4  }
0x1976   :  { %13 = sbr.rel (!%p11_p4) target bundleno = 1 (0x1), region = 66 }

</bundles_post_ra>
